<compile_context>
chip_gen: v7x
topology: tpu7x:2x2x1
jax: 0.10.0
libtpu: 0.0.40
codegen_flags: <defaults>
</compile_context>

<pallas_src>
import functools

import jax
import jax.numpy as jnp
from jax.experimental import pallas as pl
from jax.experimental.pallas import tpu as pltpu


def _primary_caps_kernel(x_ref, t_ref, p_ref, b_ref, o_ref, *, kH, B, Ho, eps):
    # x_ref: (B*H, C*W)     rows (h, b) interleaved, lanes (c, win)
    # t_ref: (kH, C*W, C*Wo) banded, channel-block-diagonal weight matrices
    # p_ref: (C*Wo, C*Wo)   block-pooling matrix (ones on the per-channel Wo x Wo blocks)
    # b_ref: (1, C*Wo)      bias broadcast over wo
    # o_ref: (B*Ho, C*Wo)   rows (ho, b), lanes (c, wo)
    rows = B * Ho
    acc = b_ref[...]                                    # (1, C*Wo); broadcasts on first add
    for i in range(kH):                                 # static unroll: 9 slices + 9 MXU pushes
        lhs = x_ref[B * i:B * i + rows, :]              # contiguous (B*Ho, C*W) sublane slice
        acc = acc + jnp.dot(lhs, t_ref[i],
                            preferred_element_type=jnp.float32,
                            precision=jax.lax.Precision.HIGHEST)
    # squash: n = ||u|| over the capsule dim (wo lanes within each channel group),
    #         out = (1 - 1/(exp(n)+eps)) * u / (n+eps)
    ss = jnp.dot(acc * acc, p_ref[...],                 # per-group sum of squares, already
                 preferred_element_type=jnp.float32,    # broadcast back across the group
                 precision=jax.lax.Precision.HIGHEST)
    n = jnp.sqrt(ss)
    scale = (1.0 - pl.reciprocal(jnp.exp(n) + eps)) * pl.reciprocal(n + eps)
    o_ref[...] = (scale * acc).astype(o_ref.dtype)


@functools.partial(jax.jit, static_argnames=("num_capsules", "dim_capsules", "stride"))
def primary_caps_forward(x, w, b, num_capsules, dim_capsules, stride=1):
    assert stride == 1  # TODO(synk): stride>1 not exercised (module default stride=1)
    B, C, H, W = x.shape
    Cw, kH, kW = w.shape
    assert Cw == C
    Ho = H - kH + 1
    Wo = W - kW + 1
    assert C * Ho * Wo == num_capsules * dim_capsules
    if not (Wo == dim_capsules and C * Ho == num_capsules):
        # TODO(synk): general capsule factorizations would need an extra in-kernel relayout.
        raise NotImplementedError("fused kernel assumes dim_capsules == conv output width")

    f32 = jnp.float32
    x = x.astype(f32)
    w = w.astype(f32)
    b = b.astype(f32)

    # Lane-dense input slab: rows (h, b) interleaved, lanes (c, win) -> (B*H, C*W) = (32, 64).
    x2 = jnp.transpose(x, (2, 0, 1, 3)).reshape(H * B, C * W)

    # Banded (Toeplitz) channel-block-diagonal weight matrices, one per kH offset:
    #   T[i, c*W + win, c*Wo + wo] = w[c, i, win - wo]   for 0 <= win - wo < kW, else 0.
    win = jnp.arange(W)
    wo = jnp.arange(Wo)
    j = win[:, None] - wo[None, :]                                   # (W, Wo)
    band = jnp.where((j >= 0) & (j < kW),
                     w[:, :, jnp.clip(j, 0, kW - 1)], 0.0)           # (C, kH, W, Wo)
    band = jnp.transpose(band, (1, 0, 2, 3))                         # (kH, C, W, Wo)
    T = (band[:, :, :, None, :] *
         jnp.eye(C, dtype=f32)[None, :, None, :, None]).reshape(kH, C * W, C * Wo)

    # Squash pooling matrix: sum of squares over wo within each channel's lane group.
    P = jnp.kron(jnp.eye(C, dtype=f32), jnp.ones((Wo, Wo), f32))     # (C*Wo, C*Wo)
    bias_row = jnp.repeat(b, Wo)[None, :]                            # (1, C*Wo)

    kernel = functools.partial(_primary_caps_kernel, kH=kH, B=B, Ho=Ho, eps=1e-20)
    out2d = pl.pallas_call(
        kernel,
        out_shape=jax.ShapeDtypeStruct((B * Ho, C * Wo), f32),
        in_specs=[pl.BlockSpec(memory_space=pltpu.MemorySpace.VMEM)] * 4,
        out_specs=pl.BlockSpec(memory_space=pltpu.MemorySpace.VMEM),
    )(x2, T, P, bias_row)

    # Rows are (ho, b), lanes (c, wo): 2 KB relayout to the module's capsule view.
    return (out2d.reshape(Ho, B, C, Wo)
                 .transpose(1, 2, 0, 3)
                 .reshape(B, num_capsules, dim_capsules))


def _reference(x, w, b, num_capsules, dim_capsules, eps=1e-20):
    # Pure-JAX reference of the PyTorch forward pass (high-precision conv for a fair 1e-5 check).
    conv = jax.lax.conv_general_dilated(
        x, w[:, None, :, :], window_strides=(1, 1), padding="VALID",
        dimension_numbers=("NCHW", "OIHW", "NCHW"),
        feature_group_count=x.shape[1],
        precision=jax.lax.Precision.HIGHEST)
    conv = conv + b[None, :, None, None]
    u = conv.reshape(x.shape[0], num_capsules, dim_capsules)
    n = jnp.linalg.norm(u, axis=-1, keepdims=True)
    return (1.0 - 1.0 / (jnp.exp(n) + eps)) * (u / (n + eps))


if __name__ == "__main__":
    # Module config: in_channels=4, kernel_size=9, num_capsules=32, dim_capsules=8, stride=1
    # Input (2, 4, 16, 16) -> conv out (2, 4, 8, 8) -> capsules (2, 32, 8).
    B, C, H, W = 2, 4, 16, 16
    kernel_size = 9
    num_capsules, dim_capsules = 32, 8

    key = jax.random.PRNGKey(0)
    kx, kw, kb = jax.random.split(key, 3)
    x = jax.random.normal(kx, (B, C, H, W), dtype=jnp.float32)
    # Deterministic synthetic parameters (Conv2d groups=C => weight (C, 1, kH, kW), bias (C,)).
    fan_in = kernel_size * kernel_size
    w = jax.random.uniform(kw, (C, kernel_size, kernel_size), jnp.float32,
                           minval=-1.0, maxval=1.0) / jnp.sqrt(float(fan_in))
    b = jax.random.uniform(kb, (C,), jnp.float32, minval=-0.1, maxval=0.1)

    out = primary_caps_forward(x, w, b, num_capsules, dim_capsules, stride=1)
    out = jax.block_until_ready(out)

    ref = _reference(x, w, b, num_capsules, dim_capsules)
    assert out.shape == (B, num_capsules, dim_capsules)
    assert jnp.allclose(out, ref, atol=1e-5, rtol=1e-5)
    print("KERNEL_OK")
</pallas_src>

<mosaic_0001>
module attributes {stable_mosaic.version = 11 : i64} {
  func.func @_primary_caps_kernel(%arg0: memref<32x64xf32, #tpu.memory_space<vmem>>, %arg1: memref<9x64x32xf32, #tpu.memory_space<vmem>>, %arg2: memref<32x32xf32, #tpu.memory_space<vmem>>, %arg3: memref<1x32xf32, #tpu.memory_space<vmem>>, %arg4: memref<16x32xf32, #tpu.memory_space<vmem>>) attributes {dimension_semantics = [], scalar_prefetch = 0 : i64, scratch_operands = 0 : i64, tpu.core_type = #tpu.core_type<tc>} {
    %c0 = arith.constant 0 : index
    %c0_0 = arith.constant 0 : index
    %0 = vector.load %arg3[%c0, %c0_0] : memref<1x32xf32, #tpu.memory_space<vmem>>, vector<1x32xf32>
    %c0_1 = arith.constant 0 : index
    %c0_2 = arith.constant 0 : index
    %1 = vector.load %arg0[%c0_1, %c0_2] : memref<32x64xf32, #tpu.memory_space<vmem>>, vector<16x64xf32>
    %c0_3 = arith.constant 0 : index
    %c0_4 = arith.constant 0 : index
    %c0_5 = arith.constant 0 : index
    %2 = vector.load %arg1[%c0_3, %c0_4, %c0_5] : memref<9x64x32xf32, #tpu.memory_space<vmem>>, vector<1x64x32xf32>
    %3 = vector.shape_cast %2 : vector<1x64x32xf32> to vector<64x32xf32>
    %cst = arith.constant dense<0.000000e+00> : vector<16x32xf32>
    %4 = tpu.matmul %1, %3, %cst {dimension_numbers = #tpu.dot_dimension_numbers<[1], [0], [0], [1], [0, 0, 1, 1], [], []>, precision = #tpu.contract_precision<fp32>} : vector<16x64xf32>, vector<64x32xf32>, vector<16x32xf32> -> vector<16x32xf32>
    %5 = vector.broadcast %0 : vector<1x32xf32> to vector<16x32xf32>
    %6 = arith.addf %5, %4 : vector<16x32xf32>
    %c2 = arith.constant 2 : index
    %c0_6 = arith.constant 0 : index
    %7 = vector.load %arg0[%c2, %c0_6] : memref<32x64xf32, #tpu.memory_space<vmem>>, vector<16x64xf32>
    %c1 = arith.constant 1 : index
    %c0_7 = arith.constant 0 : index
    %c0_8 = arith.constant 0 : index
    %8 = vector.load %arg1[%c1, %c0_7, %c0_8] : memref<9x64x32xf32, #tpu.memory_space<vmem>>, vector<1x64x32xf32>
    %9 = vector.shape_cast %8 : vector<1x64x32xf32> to vector<64x32xf32>
    %cst_9 = arith.constant dense<0.000000e+00> : vector<16x32xf32>
    %10 = tpu.matmul %7, %9, %cst_9 {dimension_numbers = #tpu.dot_dimension_numbers<[1], [0], [0], [1], [0, 0, 1, 1], [], []>, precision = #tpu.contract_precision<fp32>} : vector<16x64xf32>, vector<64x32xf32>, vector<16x32xf32> -> vector<16x32xf32>
    %11 = arith.addf %6, %10 : vector<16x32xf32>
    %c4 = arith.constant 4 : index
    %c0_10 = arith.constant 0 : index
    %12 = vector.load %arg0[%c4, %c0_10] : memref<32x64xf32, #tpu.memory_space<vmem>>, vector<16x64xf32>
    %c2_11 = arith.constant 2 : index
    %c0_12 = arith.constant 0 : index
    %c0_13 = arith.constant 0 : index
    %13 = vector.load %arg1[%c2_11, %c0_12, %c0_13] : memref<9x64x32xf32, #tpu.memory_space<vmem>>, vector<1x64x32xf32>
    %14 = vector.shape_cast %13 : vector<1x64x32xf32> to vector<64x32xf32>
    %cst_14 = arith.constant dense<0.000000e+00> : vector<16x32xf32>
    %15 = tpu.matmul %12, %14, %cst_14 {dimension_numbers = #tpu.dot_dimension_numbers<[1], [0], [0], [1], [0, 0, 1, 1], [], []>, precision = #tpu.contract_precision<fp32>} : vector<16x64xf32>, vector<64x32xf32>, vector<16x32xf32> -> vector<16x32xf32>
    %16 = arith.addf %11, %15 : vector<16x32xf32>
    %c6 = arith.constant 6 : index
    %c0_15 = arith.constant 0 : index
    %17 = vector.load %arg0[%c6, %c0_15] : memref<32x64xf32, #tpu.memory_space<vmem>>, vector<16x64xf32>
    %c3 = arith.constant 3 : index
    %c0_16 = arith.constant 0 : index
    %c0_17 = arith.constant 0 : index
    %18 = vector.load %arg1[%c3, %c0_16, %c0_17] : memref<9x64x32xf32, #tpu.memory_space<vmem>>, vector<1x64x32xf32>
    %19 = vector.shape_cast %18 : vector<1x64x32xf32> to vector<64x32xf32>
    %cst_18 = arith.constant dense<0.000000e+00> : vector<16x32xf32>
    %20 = tpu.matmul %17, %19, %cst_18 {dimension_numbers = #tpu.dot_dimension_numbers<[1], [0], [0], [1], [0, 0, 1, 1], [], []>, precision = #tpu.contract_precision<fp32>} : vector<16x64xf32>, vector<64x32xf32>, vector<16x32xf32> -> vector<16x32xf32>
    %21 = arith.addf %16, %20 : vector<16x32xf32>
    %c8 = arith.constant 8 : index
    %c0_19 = arith.constant 0 : index
    %22 = vector.load %arg0[%c8, %c0_19] : memref<32x64xf32, #tpu.memory_space<vmem>>, vector<16x64xf32>
    %c4_20 = arith.constant 4 : index
    %c0_21 = arith.constant 0 : index
    %c0_22 = arith.constant 0 : index
    %23 = vector.load %arg1[%c4_20, %c0_21, %c0_22] : memref<9x64x32xf32, #tpu.memory_space<vmem>>, vector<1x64x32xf32>
    %24 = vector.shape_cast %23 : vector<1x64x32xf32> to vector<64x32xf32>
    %cst_23 = arith.constant dense<0.000000e+00> : vector<16x32xf32>
    %25 = tpu.matmul %22, %24, %cst_23 {dimension_numbers = #tpu.dot_dimension_numbers<[1], [0], [0], [1], [0, 0, 1, 1], [], []>, precision = #tpu.contract_precision<fp32>} : vector<16x64xf32>, vector<64x32xf32>, vector<16x32xf32> -> vector<16x32xf32>
    %26 = arith.addf %21, %25 : vector<16x32xf32>
    %c10 = arith.constant 10 : index
    %c0_24 = arith.constant 0 : index
    %27 = vector.load %arg0[%c10, %c0_24] : memref<32x64xf32, #tpu.memory_space<vmem>>, vector<16x64xf32>
    %c5 = arith.constant 5 : index
    %c0_25 = arith.constant 0 : index
    %c0_26 = arith.constant 0 : index
    %28 = vector.load %arg1[%c5, %c0_25, %c0_26] : memref<9x64x32xf32, #tpu.memory_space<vmem>>, vector<1x64x32xf32>
    %29 = vector.shape_cast %28 : vector<1x64x32xf32> to vector<64x32xf32>
    %cst_27 = arith.constant dense<0.000000e+00> : vector<16x32xf32>
    %30 = tpu.matmul %27, %29, %cst_27 {dimension_numbers = #tpu.dot_dimension_numbers<[1], [0], [0], [1], [0, 0, 1, 1], [], []>, precision = #tpu.contract_precision<fp32>} : vector<16x64xf32>, vector<64x32xf32>, vector<16x32xf32> -> vector<16x32xf32>
    %31 = arith.addf %26, %30 : vector<16x32xf32>
    %c12 = arith.constant 12 : index
    %c0_28 = arith.constant 0 : index
    %32 = vector.load %arg0[%c12, %c0_28] : memref<32x64xf32, #tpu.memory_space<vmem>>, vector<16x64xf32>
    %c6_29 = arith.constant 6 : index
    %c0_30 = arith.constant 0 : index
    %c0_31 = arith.constant 0 : index
    %33 = vector.load %arg1[%c6_29, %c0_30, %c0_31] : memref<9x64x32xf32, #tpu.memory_space<vmem>>, vector<1x64x32xf32>
    %34 = vector.shape_cast %33 : vector<1x64x32xf32> to vector<64x32xf32>
    %cst_32 = arith.constant dense<0.000000e+00> : vector<16x32xf32>
    %35 = tpu.matmul %32, %34, %cst_32 {dimension_numbers = #tpu.dot_dimension_numbers<[1], [0], [0], [1], [0, 0, 1, 1], [], []>, precision = #tpu.contract_precision<fp32>} : vector<16x64xf32>, vector<64x32xf32>, vector<16x32xf32> -> vector<16x32xf32>
    %36 = arith.addf %31, %35 : vector<16x32xf32>
    %c14 = arith.constant 14 : index
    %c0_33 = arith.constant 0 : index
    %37 = vector.load %arg0[%c14, %c0_33] : memref<32x64xf32, #tpu.memory_space<vmem>>, vector<16x64xf32>
    %c7 = arith.constant 7 : index
    %c0_34 = arith.constant 0 : index
    %c0_35 = arith.constant 0 : index
    %38 = vector.load %arg1[%c7, %c0_34, %c0_35] : memref<9x64x32xf32, #tpu.memory_space<vmem>>, vector<1x64x32xf32>
    %39 = vector.shape_cast %38 : vector<1x64x32xf32> to vector<64x32xf32>
    %cst_36 = arith.constant dense<0.000000e+00> : vector<16x32xf32>
    %40 = tpu.matmul %37, %39, %cst_36 {dimension_numbers = #tpu.dot_dimension_numbers<[1], [0], [0], [1], [0, 0, 1, 1], [], []>, precision = #tpu.contract_precision<fp32>} : vector<16x64xf32>, vector<64x32xf32>, vector<16x32xf32> -> vector<16x32xf32>
    %41 = arith.addf %36, %40 : vector<16x32xf32>
    %c16 = arith.constant 16 : index
    %c0_37 = arith.constant 0 : index
    %42 = vector.load %arg0[%c16, %c0_37] : memref<32x64xf32, #tpu.memory_space<vmem>>, vector<16x64xf32>
    %c8_38 = arith.constant 8 : index
    %c0_39 = arith.constant 0 : index
    %c0_40 = arith.constant 0 : index
    %43 = vector.load %arg1[%c8_38, %c0_39, %c0_40] : memref<9x64x32xf32, #tpu.memory_space<vmem>>, vector<1x64x32xf32>
    %44 = vector.shape_cast %43 : vector<1x64x32xf32> to vector<64x32xf32>
    %cst_41 = arith.constant dense<0.000000e+00> : vector<16x32xf32>
    %45 = tpu.matmul %42, %44, %cst_41 {dimension_numbers = #tpu.dot_dimension_numbers<[1], [0], [0], [1], [0, 0, 1, 1], [], []>, precision = #tpu.contract_precision<fp32>} : vector<16x64xf32>, vector<64x32xf32>, vector<16x32xf32> -> vector<16x32xf32>
    %46 = arith.addf %41, %45 : vector<16x32xf32>
    %47 = arith.mulf %46, %46 : vector<16x32xf32>
    %c0_42 = arith.constant 0 : index
    %c0_43 = arith.constant 0 : index
    %48 = vector.load %arg2[%c0_42, %c0_43] : memref<32x32xf32, #tpu.memory_space<vmem>>, vector<32x32xf32>
    %cst_44 = arith.constant dense<0.000000e+00> : vector<16x32xf32>
    %49 = tpu.matmul %47, %48, %cst_44 {dimension_numbers = #tpu.dot_dimension_numbers<[1], [0], [0], [1], [0, 0, 1, 1], [], []>, precision = #tpu.contract_precision<fp32>} : vector<16x32xf32>, vector<32x32xf32>, vector<16x32xf32> -> vector<16x32xf32>
    %50 = math.sqrt %49 : vector<16x32xf32>
    %51 = math.exp %50 : vector<16x32xf32>
    %cst_45 = arith.constant 9.99999968E-21 : f32
    %52 = vector.broadcast %cst_45 : f32 to vector<16x32xf32>
    %53 = arith.addf %51, %52 : vector<16x32xf32>
    %54 = tpu.reciprocal %53 : vector<16x32xf32> -> vector<16x32xf32>
    %cst_46 = arith.constant 1.000000e+00 : f32
    %55 = vector.broadcast %cst_46 : f32 to vector<16x32xf32>
    %56 = arith.subf %55, %54 : vector<16x32xf32>
    %cst_47 = arith.constant 9.99999968E-21 : f32
    %57 = vector.broadcast %cst_47 : f32 to vector<16x32xf32>
    %58 = arith.addf %50, %57 : vector<16x32xf32>
    %59 = tpu.reciprocal %58 : vector<16x32xf32> -> vector<16x32xf32>
    %60 = arith.mulf %56, %59 : vector<16x32xf32>
    %61 = arith.mulf %60, %46 : vector<16x32xf32>
    %c0_48 = arith.constant 0 : index
    %c0_49 = arith.constant 0 : index
    %62 = vector.load %arg4[%c0_48, %c0_49] : memref<16x32xf32, #tpu.memory_space<vmem>>, vector<16x32xf32>
    tpu.vector_store %arg4[%c0_48, %c0_49], %61 {strides = array<i32>} : memref<16x32xf32, #tpu.memory_space<vmem>>, vector<16x32xf32>,
    return
  }
}

</mosaic_0001>

<bundles_post_ra>
// kernel: primary_caps_forward.1
= control target key start
LH: loop header
LB: loop body
LE: loop exit
PB: predicated region body
PF: predicated region fallthrough
CT: control target
= control target key end

     0   :  { %vm28_vm0 = vcmask 523264   ;;  %vm5421_vm1 = vcmask 261120   ;;  %s10443_s1 = inlined_call_operand.vmem [shape: f32[9,64,32], index: 1, kind: input, shape index: {}]   ;;  %s10444_s0 = inlined_call_operand.vmem [shape: f32[32,64], index: 0, kind: input, shape index: {}]   ;;  %s10445_s2 = inlined_call_operand.vmem [shape: f32[32,32], index: 2, kind: input, shape index: {}]   ;;  %s10446_s3 = inlined_call_operand.vmem [shape: f32[1,32], index: 3, kind: input, shape index: {}]   ;;  %s10447_s4 = inlined_call_operand.vmem [shape: f32[16,32], index: 4, kind: output, shape index: {}]  }
   0x1   :  { %v20_v0 = vld [vmem:[%s10443_s1] sm:$0xff]  ;;  %v21_v1 = vld [vmem:[%s10443_s1 + $0x8] sm:$0xff]  ;;  %v8807_v2 = vld [vmem:[%s10443_s1 + $0x10] sm:$0xff] }
   0x2   :  { %v36_v3 = vand.u32 4294901760, %v20_v0  ;;  %v39_v4 = vand.u32 4294901760, %v21_v1  ;;  %v8812_v5 = vld [vmem:[%s10443_s1 + $0x18] sm:$0xff]  ;;  %v42_v6 = vand.u32 4294901760, %v8807_v2  ;;  %v8818_v7 = vld [vmem:[%s10443_s1 + $0x20] sm:$0xff]  ;;  %v8823_v8 = vld [vmem:[%s10443_s1 + $0x28] sm:$0xff] }
   0x3   :  { %v45_v9 = vand.u32 4294901760, %v8812_v5  ;;  %v48_v10 = vand.u32 4294901760, %v8818_v7  ;;  %v51_v11 = vand.u32 4294901760, %v8823_v8  ;;  %v8831_v12 = vld [vmem:[%s10443_s1 + $0x100] sm:$0xff]  ;;  %v8836_v13 = vld [vmem:[%s10443_s1 + $0x108] sm:$0xff]  ;;  %v8841_v14 = vld [vmem:[%s10443_s1 + $0x30] sm:$0xff] }
   0x4   :  { %v8843_v15 = vpack.c.bf16 %v39_v4, %v36_v3  ;;  %v2438_v16 = vand.u32 4294901760, %v8831_v12  ;;  %v2441_v17 = vand.u32 4294901760, %v8836_v13  ;;  %v8850_v18 = vld [vmem:[%s10443_s1 + $0x38] sm:$0xff]  ;;  %v54_v19 = vand.u32 4294901760, %v8841_v14  ;;  %v8856_v20 = vld [vmem:[%s10443_s1 + $0x110] sm:$0xff]  ;;  %v18_v25 = vld [vmem:[%s10444_s0] sm:$0xff] }
   0x5   :  { %v8861_v21 = vld [vmem:[%s10443_s1 + $0x118] sm:$0xff]  ;;  %v8867_v22 = vpack.c.bf16 %v45_v9, %v42_v6  ;;  %v57_v23 = vand.u32 4294901760, %v8850_v18  ;;  %v2444_v24 = vand.u32 4294901760, %v8856_v20  ;;  %v8891_v29 = vpack.c.bf16 %v51_v11, %v48_v10  ;;  %v8904_v33 = vld [vmem:[%s10443_s1 + $0x120] sm:$0xff]  ;;  %v8929_v42 = vld [vmem:[%s10443_s1 + $0x128] sm:$0xff] }
   0x6   :  { %7728 = vmatprep.subr.bf16.mxu1 %v8843_v15  ;;  %v8878_v26 = vsub.f32 %v8831_v12, %v2438_v16  ;;  %v8883_v27 = vsub.f32 %v8836_v13, %v2441_v17  ;;  %v2447_v28 = vand.u32 4294901760, %v8861_v21  ;;  %v30_v31 = vsel %vm28_vm0, %v18_v25, 0  ;;  %v19_v55 = vld [vmem:[%s10444_s0 + $0x8] sm:$0xff] }
   0x7   :  { %7730 = vmatpush3.bf16.msra.mxu1 %v8843_v15  ;;  %v8896_v30 = vsub.f32 %v8856_v20, %v2444_v24  ;;  %v8899_v32 = vsub.f32 %v20_v0, %v36_v3  ;;  %v8913_v36 = vpack.c.bf16 %v57_v23, %v54_v19  ;;  %v8921_v39 = vand.u32 4294901760, %v30_v31 }
   0x8   :  { %7732 = vmatprep.subr.bf16.mxu1 %v8867_v22  ;;  %v2533_v34 = vand.u32 4294901760, %v8878_v26  ;;  %v2540_v35 = vand.u32 4294901760, %v8883_v27  ;;  %v8918_v37 = vsub.f32 %v8861_v21, %v2447_v28  ;;  %v8924_v41 = vsub.f32 %v21_v1, %v39_v4  ;;  %v8980_v4 = vld [vmem:[%s10443_s1 + $0x130] sm:$0xff] }
   0x9   :  { %v2547_v38 = vand.u32 4294901760, %v8896_v30  ;;  %v10453_v40 = vand.u32 4294901760, %v8899_v32  ;;  %v2450_v46 = vand.u32 4294901760, %v8904_v33  ;;  %v8944_v48 = vsub.f32 %v30_v31, %v8921_v39 }
   0xa   :  { %v2534_v43 = vsub.f32 %v8878_v26, %v2533_v34  ;;  %v2541_v44 = vsub.f32 %v8883_v27, %v2540_v35  ;;  %v2554_v45 = vand.u32 4294901760, %v8918_v37  ;;  %v10452_v50 = vand.u32 4294901760, %v8924_v41 }
   0xb   :  { %7734 = vmatpush3.bf16.msra.mxu1 %v8867_v22  ;;  %v2548_v47 = vsub.f32 %v8896_v30, %v2547_v38  ;;  %v132_v49 = vsub.f32 %v8899_v32, %v10453_v40  ;;  %v2453_v54 = vand.u32 4294901760, %v8929_v42  ;;  %v110_v57 = vand.u32 4294901760, %v8944_v48 }
   0xc   :  { %7736 = vmatprep.subr.bf16.mxu1 %v8891_v29  ;;  %v2535_v51 = vand.u32 4294901760, %v2534_v43  ;;  %v2542_v52 = vand.u32 4294901760, %v2541_v44  ;;  %v2555_v53 = vsub.f32 %v8918_v37, %v2554_v45  ;;  %v139_v59 = vsub.f32 %v8924_v41, %v10452_v50 }
   0xd   :  { %v2549_v56 = vand.u32 4294901760, %v2548_v47  ;;  %v133_v58 = vand.u32 4294901760, %v132_v49  ;;  %v8965_v62 = vsub.f32 %v8904_v33, %v2450_v46  ;;  %v111_v63 = vsub.f32 %v8944_v48, %v110_v57  ;;  %v8994_v47 = vld [vmem:[%s10443_s1 + $0x138] sm:$0xff] }
   0xe   :  { %v8127_v60 = vpack.c.bf16 %v2542_v52, %v2535_v51  ;;  %v2556_v61 = vand.u32 4294901760, %v2555_v53  ;;  %v140_v0 = vand.u32 4294901760, %v139_v59  ;;  %v8974_v1 = vsub.f32 %v8929_v42, %v2453_v54 }
   0xf   :  { %7738 = vmatpush3.bf16.msra.mxu1 %v8891_v29  ;;  %v33_v3 = vsel %vm28_vm0, %v19_v55, 0  ;;  %v10450_v31 = vand.u32 4294901760, %v8965_v62  ;;  %v8989_v44 = vsub.f32 %v8807_v2, %v42_v6  ;;  %v112_v49 = vand.u32 4294901760, %v111_v63 }
  0x10   :  { %8128 = vmatprep.subr.bf16.mxu0 %v8127_v60  ;;  %7740 = vmatprep.subr.bf16.mxu1 %v8913_v36  ;;  %v8131_v25 = vpack.c.bf16 %v2556_v61, %v2549_v56  ;;  %v8984_v43 = vand.u32 4294901760, %v33_v3  ;;  %v7743_v51 = vpack.c.bf16 %v140_v0, %v133_v58  ;;  %v10449_v52 = vand.u32 4294901760, %v8974_v1 }
  0x11   :  { %8130 = vmatpush3.bf16.msra.mxu0 %v8127_v60  ;;  %v9000_v53 = vsub.f32 %v8812_v5, %v45_v9  ;;  %v2562_v2 = vsub.f32 %v8965_v62, %v10450_v31  ;;  %v10448_v55 = vand.u32 4294901760, %v8989_v44  ;;  %v2456_v56 = vand.u32 4294901760, %v8980_v4  ;;  %6651 = vmatprep.mubr.f32.mxu1 %v112_v49 }
  0x12   :  { %8132 = vmatprep.subr.bf16.mxu0 %v8131_v25  ;;  %v9006_v6 = vsub.f32 %v33_v3, %v8984_v43  ;;  %7126 = vmatprep.mubr.f32.mxu0 %v8984_v43  ;;  %v2569_v5 = vsub.f32 %v8974_v1, %v10449_v52  ;;  %v2459_v58 = vand.u32 4294901760, %v8994_v47  ;;  %v9020_v59 = vsub.f32 %v8818_v7, %v48_v10 }
  0x13   :  { %7742 = vmatpush3.bf16.msra.mxu1 %v8913_v36  ;;  %v10451_v9 = vand.u32 4294901760, %v9000_v53  ;;  %v2563_v60 = vand.u32 4294901760, %v2562_v2  ;;  %v146_v63 = vsub.f32 %v8989_v44, %v10448_v55  ;;  %v9031_v0 = vsub.f32 %v8980_v4, %v2456_v56  ;;  %v6027_v4 = vld [vmem:[%s10443_s1 + $0x140] sm:$0xff] }
  0x14   :  { %7744 = vmatprep.subr.bf16.mxu1 %v7743_v51  ;;  %v9023_v61 = vand.u32 4294901760, %v9006_v6  ;;  %v2570_v3 = vand.u32 4294901760, %v2569_v5  ;;  %v9039_v10 = vsub.f32 %v8994_v47, %v2459_v58  ;;  %v10454_v52 = vand.u32 4294901760, %v9020_v59 }
  0x15   :  { %8134 = vmatpush3.bf16.msra.mxu0 %v8131_v25  ;;  %v153_v7 = vsub.f32 %v9000_v53, %v10451_v9  ;;  %v147_v2 = vand.u32 4294901760, %v146_v63  ;;  %v2575_v55 = vand.u32 4294901760, %v9031_v0  ;;  %v9049_v9 = vsub.f32 %v8823_v8, %v51_v11  ;;  %v2421_v8 = vld [vmem:[%s10444_s0 + $0x10] sm:$0xff] }
  0x16   :  { %v121_v49 = vsub.f32 %v9006_v6, %v9023_v61  ;;  %v8135_v31 = vpack.c.bf16 %v2570_v3, %v2563_v60  ;;  %v10455_v5 = vand.u32 4294901760, %v9039_v10  ;;  %v160_v63 = vsub.f32 %v9020_v59, %v10454_v52 }
  0x17   :  { %v154_v25 = vand.u32 4294901760, %v153_v7  ;;  %v2576_v40 = vsub.f32 %v9031_v0, %v2575_v55  ;;  %v166_v7 = vand.u32 4294901760, %v9049_v9  ;;  %v9134_v12 = vpack.c.bf16 %v2453_v54, %v2450_v46 }
  0x18   :  { %v9051_v50 = vand.u32 4294901760, %v121_v49  ;;  %8136 = vmatprep.subr.bf16.mxu0 %v8135_v31  ;;  %v2583_v3 = vsub.f32 %v9039_v10, %v10455_v5  ;;  %v9070_v49 = vsub.f32 %v8841_v14, %v54_v19  ;;  %v9078_v5 = vsub.f32 %v8850_v18, %v57_v23 }
  0x19   :  { %v7747_v60 = vpack.c.bf16 %v154_v25, %v147_v2  ;;  %8138 = vmatpush3.bf16.msra.mxu0 %v8135_v31  ;;  %v2577_v11 = vand.u32 4294901760, %v2576_v40  ;;  %v161_v25 = vand.u32 4294901760, %v160_v63  ;;  %v167_v52 = vsub.f32 %v9049_v9, %v166_v7 }
  0x1a   :  { %6652 = vmatmul.mubr.f32.vlgmr.msra.gmra.mrb[0].mxu1 %v9051_v50  ;;  %v2584_v2 = vand.u32 4294901760, %v2583_v3  ;;  %v2435_v40 = vsel %vm28_vm0, %v2421_v8, 0  ;;  %v10456_v14 = vand.u32 4294901760, %v9070_v49  ;;  %v180_v63 = vand.u32 4294901760, %v9078_v5 }
  0x1b   :  { %7746 = vmatpush3.bf16.msra.mxu1 %v7743_v51  ;;  %6670 = vmatprep.mubr.f32.mxu1 %v8921_v39  ;;  %v168_v31 = vand.u32 4294901760, %v167_v52  ;;  %v8143_v51 = vpack.c.bf16 %v8883_v27, %v8878_v26  ;;  %v9089_v23 = vand.u32 4294901760, %v2435_v40  ;;  %v9144_v13 = vpack.c.bf16 %v2459_v58, %v2456_v56  ;;  %v6029_v56 = vld [vmem:[%s10443_s1 + $0x150] sm:$0xff] }
  0x1c   :  { %7748 = vmatprep.subr.bf16.mxu1 %v7747_v60  ;;  %v8139_v19 = vpack.c.bf16 %v2584_v2, %v2577_v11  ;;  %v174_v3 = vsub.f32 %v9070_v49, %v10456_v14  ;;  %v181_v8 = vsub.f32 %v9078_v5, %v180_v63  ;;  %v8147_v2 = vpack.c.bf16 %v8918_v37, %v8896_v30 }
  0x1d   :  { %v7751_v18 = vpack.c.bf16 %v168_v31, %v161_v25  ;;  %v8151_v25 = vpack.c.bf16 %v8974_v1, %v8965_v62  ;;  %v8155_v31 = vpack.c.bf16 %v9039_v10, %v9031_v0  ;;  %v8179_v20 = vpack.c.bf16 %v2554_v45, %v2547_v38  ;;  %v3019_v38 = vld [vmem:[%s10444_s0 + $0xa] sm:$0xff] }
  0x1e   :  { %8140 = vmatprep.subr.bf16.mxu0 %v8139_v19  ;;  %v175_v52 = vand.u32 4294901760, %v174_v3  ;;  %v182_v11 = vand.u32 4294901760, %v181_v8  ;;  %v9117_v3 = vsub.f32 %v2435_v40, %v9089_v23  ;;  %v9125_v8 = vpack.c.bf16 %v2447_v28, %v2444_v24 }
  0x1f   :  { %7750 = vmatpush3.bf16.msra.mxu1 %v7747_v60  ;;  %8142 = vmatpush3.bf16.msra.mxu0 %v8139_v19  ;;  %v7759_v60 = vpack.c.bf16 %v8924_v41, %v8899_v32  ;;  %v7763_v19 = vpack.c.bf16 %v9000_v53, %v8989_v44  ;;  %v10488_v21 = vand.u32 4294901760, %v8899_v32  ;;  %v10489_v24 = vand.u32 4294901760, %v8924_v41 }
  0x20   :  { %7752 = vmatprep.subr.bf16.mxu1 %v7751_v18  ;;  %8144 = vmatprep.subr.bf16.mxu0 %v8143_v51  ;;  %v7755_v14 = vpack.c.bf16 %v182_v11, %v175_v52  ;;  %v10490_v27 = vand.u32 4294901760, %v8965_v62  ;;  %v10491_v28 = vand.u32 4294901760, %v8974_v1  ;;  %v10492_v33 = vand.u32 4294901760, %v8989_v44  ;;  %v6028_v44 = vld [vmem:[%s10443_s1 + $0x148] sm:$0xff] }
  0x21   :  { %v7791_v26 = vpack.c.bf16 %v10489_v24, %v10488_v21  ;;  %v10495_v41 = vand.u32 4294901760, %v9020_v59  ;;  %v3031_v45 = vsel %vm28_vm0, %v3019_v38, 0  ;;  %v10496_v46 = vand.u32 4294901760, %v9070_v49 }
  0x22   :  { %7127 = vmatmul.mubr.f32.vlgmr.msra.gmra.mrb[0].mxu0 %v9089_v23  ;;  %v8183_v30 = vpack.c.bf16 %v10491_v28, %v10490_v27  ;;  %v9203_v54 = vand.u32 4294901760, %v3031_v45 }
  0x23   :  { %7754 = vmatpush3.bf16.msra.mxu1 %v7751_v18  ;;  %8146 = vmatpush3.bf16.msra.mxu0 %v8143_v51  ;;  %v7767_v51 = vpack.c.bf16 %v9049_v9, %v9020_v59  ;;  %v7771_v18 = vpack.c.bf16 %v9078_v5, %v9070_v49  ;;  %v7799_v42 = vpack.c.bf16 %v166_v7, %v10495_v41  ;;  %v6030_v9 = vld [vmem:[%s10443_s1 + $0x158] sm:$0xff]  ;;  %v5995_v59 = vld [vmem:[%s10443_s1 + $0x40] sm:$0xff]  ;;  %v3043_v5 = vand.u32 4294901760, %v6029_v56 }
  0x24   :  { %7145 = vmatprep.mubr.f32.mxu0 %v9006_v6  ;;  %7756 = vmatprep.subr.bf16.mxu1 %v7755_v14  ;;  %v9214_v1 = vsub.f32 %v3031_v45, %v9203_v54  ;;  %v3046_v7 = vand.u32 4294901760, %v6030_v9  ;;  %v6031_v49 = vld [vmem:[%s10443_s1 + $0x160] sm:$0xff]  ;;  %v641_v11 = vand.u32 4294901760, %v5995_v59 }
  0x25   :  { %8148 = vmatprep.subr.bf16.mxu0 %v8147_v2 }
  0x26   :  { %v9237_v58 = vand.u32 4294901760, %v9214_v1  ;;  %v9295_v27 = vpack.c.bf16 %v3046_v7, %v3043_v5 }
  0x27   :  { %7758 = vmatpush3.bf16.msra.mxu1 %v7755_v14  ;;  %8150 = vmatpush3.bf16.msra.mxu0 %v8147_v2  ;;  %v9114_v14 = vpack.c.bf16 %v2441_v17, %v2438_v16  ;;  %v8175_v16 = vpack.c.bf16 %v2540_v35, %v2533_v34  ;;  %v10457_v17 = vand.u32 4294901760, %v9117_v3  ;;  %v10493_v34 = vand.u32 4294901760, %v9000_v53  ;;  %v3020_v53 = vld [vmem:[%s10444_s0 + $0x12] sm:$0xff] }
  0x28   :  { %7760 = vmatprep.subr.bf16.mxu1 %v7759_v60  ;;  %8152 = vmatprep.subr.bf16.mxu0 %v8151_v25  ;;  %v10494_v35 = vand.u32 4294901760, %v9039_v10  ;;  %v3034_v0 = vsel %vm28_vm0, %v3020_v53, 0 }
  0x29   :  { %v7795_v32 = vpack.c.bf16 %v10493_v34, %v10492_v33 }
  0x2a   :  { %6671 = vmatmul.mubr.f32.vlgmr.msra.gmra.mrb[0].mxu1 %v8984_v43  ;;  %v8187_v37 = vpack.c.bf16 %v10494_v35, %v2575_v55  ;;  %v3040_v55 = vand.u32 4294901760, %v6028_v44 }
  0x2b   :  { %7762 = vmatpush3.bf16.msra.mxu1 %v7759_v60  ;;  %6689 = vmatprep.mubr.f32.mxu1 %v8944_v48  ;;  %v7803_v48 = vpack.c.bf16 %v180_v63, %v10496_v46  ;;  %v5998_v60 = vld [vmem:[%s10443_s1 + $0x58] sm:$0xff]  ;;  %v9319_v46 = vsub.f32 %v5995_v59, %v641_v11 }
  0x2c   :  { %8154 = vmatpush3.bf16.msra.mxu0 %v8151_v25  ;;  %7764 = vmatprep.subr.bf16.mxu1 %v7763_v19  ;;  %v9265_v63 = vsub.f32 %v6028_v44, %v3040_v55  ;;  %v3112_v25 = vsub.f32 %v9214_v1, %v9237_v58  ;;  %v650_v28 = vand.u32 4294901760, %v5998_v60 }
  0x2d   :  { %8156 = vmatprep.subr.bf16.mxu0 %v8155_v31 }
  0x2e   :  { %v9312_v38 = vand.u32 4294901760, %v3112_v25 }
  0x2f   :  { %7766 = vmatpush3.bf16.msra.mxu1 %v7763_v19  ;;  %v9278_v19 = vld [vmem:[%s10443_s1 + $0x170] sm:$0xff] }
  0x30   :  { %8158 = vmatpush3.bf16.msra.mxu0 %v8155_v31  ;;  %7768 = vmatprep.subr.bf16.mxu1 %v7767_v51  ;;  %v9283_v31 = vld [vmem:[%s10443_s1 + $0x178] sm:$0xff] }
  0x31   :  { %8160 = vmatprep.subr.bf16.mxu0 %v9114_v14  ;;  %v3058_v35 = vand.u32 4294901760, %v9283_v31 }
  0x33   :  { %7770 = vmatpush3.bf16.msra.mxu1 %v7767_v51  ;;  %7146 = vmatmul.mubr.f32.vlgmr.msra.gmra.mrb[0].mxu0 %v9117_v3  ;;  %v9285_v51 = vand.u32 4294901760, %v3034_v0 }
  0x34   :  { %8162 = vmatpush3.bf16.msra.mxu0 %v9114_v14  ;;  %7772 = vmatprep.subr.bf16.mxu1 %v7771_v18 }
  0x35   :  { %8164 = vmatprep.subr.bf16.mxu0 %v9125_v8  ;;  %7164 = vmatprep.mubr.f32.mxu0 %v9023_v61  ;;  %v9315_v41 = vsub.f32 %v3034_v0, %v9285_v51 }
  0x37   :  { %7774 = vmatpush3.bf16.msra.mxu1 %v7771_v18  ;;  %v9287_v18 = vsub.f32 %v6029_v56, %v3043_v5  ;;  %v10460_v59 = vand.u32 4294901760, %v9315_v41  ;;  %v10459_v5 = vand.u32 4294901760, %v9319_v46 }
  0x38   :  { %8166 = vmatpush3.bf16.msra.mxu0 %v9125_v8  ;;  %7776 = vmatprep.subr.bf16.mxu1 %v8843_v15 }
  0x39   :  { %8168 = vmatprep.subr.bf16.mxu0 %v9134_v12 }
  0x3a   :  { %6690 = vmatmul.mubr.f32.vlgmr.msra.gmra.mrb[0].mxu1 %v9006_v6  ;;  %v3037_v6 = vand.u32 4294901760, %v6027_v4 }
  0x3b   :  { %7778 = vmatpush3.bf16.msra.mxu1 %v8843_v15  ;;  %6708 = vmatprep.mubr.f32.mxu1 %v110_v57  ;;  %v623_v57 = vld [vmem:[%s10444_s0 + $0x2] sm:$0xff] }
  0x3c   :  { %8170 = vmatpush3.bf16.msra.mxu0 %v9134_v12  ;;  %7780 = vmatprep.subr.bf16.mxu1 %v8867_v22  ;;  %v635_v62 = vsel %vm28_vm0, %v623_v57, 0  ;;  %v9263_v40 = vsub.f32 %v6027_v4, %v3037_v6  ;;  %v9268_v52 = vpack.c.bf16 %v3040_v55, %v3037_v6  ;;  %v6001_v55 = vld [vmem:[%s10443_s1 + $0x70] sm:$0xff] }
  0x3d   :  { %8172 = vmatprep.subr.bf16.mxu0 %v9144_v13  ;;  %v9222_v47 = vand.u32 4294901760, %v635_v62 }
  0x3e   :  { %v3132_v33 = vand.u32 4294901760, %v9263_v40 }
  0x3f   :  { %7782 = vmatpush3.bf16.msra.mxu1 %v8867_v22  ;;  %v9250_v10 = vsub.f32 %v635_v62, %v9222_v47 }
  0x40   :  { %8174 = vmatpush3.bf16.msra.mxu0 %v9144_v13  ;;  %7784 = vmatprep.subr.bf16.mxu1 %v8891_v29 }
  0x41   :  { %8176 = vmatprep.subr.bf16.mxu0 %v8175_v16 }
  0x43   :  { %7786 = vmatpush3.bf16.msra.mxu1 %v8891_v29  ;;  %7165 = vmatmul.mubr.f32.vlgmr.msra.gmra.mrb[0].mxu0 %v10457_v17 }
  0x44   :  { %8178 = vmatpush3.bf16.msra.mxu0 %v8175_v16  ;;  %7788 = vmatprep.subr.bf16.mxu1 %v8913_v36  ;;  %v9289_v16 = vsub.f32 %v6030_v9, %v3046_v7  ;;  %v6002_v7 = vld [vmem:[%s10443_s1 + $0x78] sm:$0xff] }
  0x45   :  { %8180 = vmatprep.subr.bf16.mxu0 %v8179_v20  ;;  %7183 = vmatprep.mubr.f32.mxu0 %v8984_v43 }
  0x46   :  { %v10465_v45 = vand.u32 4294901760, %v9289_v16 }
  0x47   :  { %7790 = vmatpush3.bf16.msra.mxu1 %v8913_v36 }
  0x48   :  { %8182 = vmatpush3.bf16.msra.mxu0 %v8179_v20  ;;  %7792 = vmatprep.subr.bf16.mxu1 %v7791_v26  ;;  %v3049_v20 = vand.u32 4294901760, %v6031_v49  ;;  %v3154_v0 = vsub.f32 %v9289_v16, %v10465_v45 }
  0x49   :  { %8184 = vmatprep.subr.bf16.mxu0 %v8183_v30 }
  0x4a   :  { %6709 = vmatmul.mubr.f32.vlgmr.msra.gmra.mrb[0].mxu1 %v9023_v61  ;;  %v5996_v61 = vld [vmem:[%s10443_s1 + $0x48] sm:$0xff]  ;;  %v9348_v56 = vsub.f32 %v6031_v49, %v3049_v20 }
  0x4b   :  { %7794 = vmatpush3.bf16.msra.mxu1 %v7791_v26  ;;  %6727 = vmatprep.mubr.f32.mxu1 %v8921_v39  ;;  %v644_v2 = vand.u32 4294901760, %v5996_v61  ;;  %v715_v26 = vand.u32 4294901760, %v9250_v10 }
  0x4c   :  { %8186 = vmatpush3.bf16.msra.mxu0 %v8183_v30  ;;  %7796 = vmatprep.subr.bf16.mxu1 %v7795_v32  ;;  %v9300_v30 = vld [vmem:[%s10443_s1 + $0x60] sm:$0xff]  ;;  %v10462_v17 = vand.u32 4294901760, %v9348_v56 }
  0x4d   :  { %8188 = vmatprep.subr.bf16.mxu0 %v8187_v37  ;;  %v9305_v34 = vpack.c.bf16 %v644_v2, %v641_v11  ;;  %v653_v57 = vand.u32 4294901760, %v9300_v30  ;;  %v716_v62 = vsub.f32 %v9250_v10, %v715_v26  ;;  %v9329_v4 = vsub.f32 %v5996_v61, %v644_v2 }
  0x4e   :  { %v9367_v2 = vsub.f32 %v5998_v60, %v650_v28  ;;  %v9380_v60 = vsub.f32 %v9283_v31, %v3058_v35 }
  0x4f   :  { %7798 = vmatpush3.bf16.msra.mxu1 %v7795_v32  ;;  %v3055_v32 = vand.u32 4294901760, %v9278_v19  ;;  %v717_v49 = vand.u32 4294901760, %v716_v62 }
  0x50   :  { %8190 = vmatpush3.bf16.msra.mxu0 %v8187_v37  ;;  %7800 = vmatprep.subr.bf16.mxu1 %v7799_v42  ;;  %v6000_v37 = vld [vmem:[%s10443_s1 + $0x68] sm:$0xff] }
  0x51   :  { %8192 = vmatprep.subr.bf16.mxu0 %v9114_v14  ;;  %v656_v53 = vand.u32 4294901760, %v6000_v37  ;;  %v9342_v6 = vpack.c.bf16 %v3058_v35, %v3055_v32 }
  0x53   :  { %7802 = vmatpush3.bf16.msra.mxu1 %v7799_v42  ;;  %7184 = vmatmul.mubr.f32.vlgmr.msra.gmra.mrb[0].mxu0 %v9089_v23  ;;  %v10466_v42 = vand.u32 4294901760, %v9287_v18  ;;  %v9371_v25 = vpack.c.bf16 %v656_v53, %v653_v57 }
  0x54   :  { %8194 = vmatpush3.bf16.msra.mxu0 %v9114_v14  ;;  %7804 = vmatprep.subr.bf16.mxu1 %v7803_v48 }
  0x55   :  { %8196 = vmatprep.subr.bf16.mxu0 %v9125_v8  ;;  %7202 = vmatprep.mubr.f32.mxu0 %v8984_v43  ;;  %v3147_v61 = vsub.f32 %v9287_v18, %v10466_v42 }
  0x57   :  { %7806 = vmatpush3.bf16.msra.mxu1 %v7803_v48 }
  0x58   :  { %8198 = vmatpush3.bf16.msra.mxu0 %v9125_v8  ;;  %7808 = vmatprep.subr.bf16.mxu1 %v8843_v15 }
  0x59   :  { %8200 = vmatprep.subr.bf16.mxu0 %v9134_v12 }
  0x5a   :  { %6728 = vmatmul.mubr.f32.vlgmr.msra.gmra.mrb[0].mxu1 %v8984_v43 }
  0x5b   :  { %7810 = vmatpush3.bf16.msra.mxu1 %v8843_v15  ;;  %6746 = vmatprep.mubr.f32.mxu1 %v8921_v39  ;;  %v6032_v15 = vld [vmem:[%s10443_s1 + $0x168] sm:$0xff]  ;;  %v5997_v39 = vld [vmem:[%s10443_s1 + $0x50] sm:$0xff] }
  0x5c   :  { %8202 = vmatpush3.bf16.msra.mxu0 %v9134_v12  ;;  %7812 = vmatprep.subr.bf16.mxu1 %v8867_v22  ;;  %v3052_v21 = vand.u32 4294901760, %v6032_v15  ;;  %v647_v24 = vand.u32 4294901760, %v5997_v39 }
  0x5d   :  { %8204 = vmatprep.subr.bf16.mxu0 %v9144_v13 }
  0x5e   :  { %v9323_v48 = vpack.c.bf16 %v3052_v21, %v3049_v20  ;;  %v9333_v44 = vpack.c.bf16 %v650_v28, %v647_v24  ;;  %v9350_v9 = vsub.f32 %v6032_v15, %v3052_v21  ;;  %v10458_v15 = vand.u32 4294901760, %v9329_v4 }
  0x5f   :  { %7814 = vmatpush3.bf16.msra.mxu1 %v8867_v22  ;;  %v3139_v22 = vand.u32 4294901760, %v9265_v63  ;;  %v9365_v11 = vsub.f32 %v5997_v39, %v647_v24  ;;  %v9377_v39 = vsub.f32 %v9278_v19, %v3055_v32  ;;  %v3122_v24 = vsub.f32 %v9315_v41, %v10460_v59 }
  0x60   :  { %8206 = vmatpush3.bf16.msra.mxu0 %v9144_v13  ;;  %7816 = vmatprep.subr.bf16.mxu1 %v8891_v29  ;;  %v10461_v62 = vand.u32 4294901760, %v9350_v9  ;;  %v662_v28 = vand.u32 4294901760, %v6002_v7  ;;  %v737_v19 = vsub.f32 %v9319_v46, %v10459_v5  ;;  %v744_v31 = vsub.f32 %v9329_v4, %v10458_v15 }
  0x61   :  { %8208 = vmatprep.subr.bf16.mxu0 %v9268_v52  ;;  %v10464_v32 = vand.u32 4294901760, %v9367_v2  ;;  %v3174_v5 = vand.u32 4294901760, %v9377_v39  ;;  %v3181_v59 = vand.u32 4294901760, %v9380_v60 }
  0x62   :  { %v3168_v15 = vsub.f32 %v9350_v9, %v10461_v62 }
  0x63   :  { %7818 = vmatpush3.bf16.msra.mxu1 %v8891_v29  ;;  %7203 = vmatmul.mubr.f32.vlgmr.msra.gmra.mrb[0].mxu0 %v9089_v23  ;;  %v3133_v29 = vsub.f32 %v9263_v40, %v3132_v33  ;;  %v3140_v23 = vsub.f32 %v9265_v63, %v3139_v22  ;;  %v758_v62 = vsub.f32 %v9367_v2, %v10464_v32 }
  0x64   :  { %8210 = vmatpush3.bf16.msra.mxu0 %v9268_v52  ;;  %7820 = vmatprep.subr.bf16.mxu1 %v8913_v36  ;;  %v3182_v32 = vsub.f32 %v9380_v60, %v3181_v59 }
  0x65   :  { %8212 = vmatprep.subr.bf16.mxu0 %v9295_v27  ;;  %7221 = vmatprep.mubr.f32.mxu0 %v9312_v38  ;;  %v3134_v20 = vand.u32 4294901760, %v3133_v29  ;;  %v3141_v21 = vand.u32 4294901760, %v3140_v23  ;;  %v3148_v29 = vand.u32 4294901760, %v3147_v61  ;;  %v3155_v23 = vand.u32 4294901760, %v3154_v0 }
  0x66   :  { %v9398_v61 = vsub.f32 %v9300_v30, %v653_v57  ;;  %v9400_v0 = vsub.f32 %v6000_v37, %v656_v53  ;;  %v738_v37 = vand.u32 4294901760, %v737_v19  ;;  %v745_v57 = vand.u32 4294901760, %v744_v31 }
  0x67   :  { %7822 = vmatpush3.bf16.msra.mxu1 %v8913_v36  ;;  %v659_v36 = vand.u32 4294901760, %v6001_v55  ;;  %v8223_v35 = vpack.c.bf16 %v3141_v21, %v3134_v20  ;;  %v3123_v20 = vand.u32 4294901760, %v3122_v24  ;;  %v8227_v30 = vpack.c.bf16 %v3155_v23, %v3148_v29 }
  0x68   :  { %8214 = vmatpush3.bf16.msra.mxu0 %v9295_v27  ;;  %7824 = vmatprep.subr.bf16.mxu1 %v9305_v34  ;;  %v764_v24 = vand.u32 4294901760, %v9398_v61  ;;  %v10467_v29 = vand.u32 4294901760, %v9400_v0  ;;  %v9426_v19 = vsub.f32 %v6002_v7, %v662_v28  ;;  %v7839_v45 = vpack.c.bf16 %v745_v57, %v738_v37 }
  0x69   :  { %8216 = vmatprep.subr.bf16.mxu0 %v9323_v48  ;;  %v9411_v21 = vpack.c.bf16 %v662_v28, %v659_v36  ;;  %v9424_v23 = vsub.f32 %v6001_v55, %v659_v36  ;;  %v759_v55 = vand.u32 4294901760, %v758_v62  ;;  %v3183_v37 = vand.u32 4294901760, %v3182_v32 }
  0x6a   :  { %6747 = vmatmul.mubr.f32.vlgmr.msra.gmra.mrb[0].mxu1 %v8984_v43  ;;  %v10463_v43 = vand.u32 4294901760, %v9365_v11  ;;  %v765_v7 = vsub.f32 %v9398_v61, %v764_v24  ;;  %v785_v28 = vand.u32 4294901760, %v9426_v19 }
  0x6b   :  { %7826 = vmatpush3.bf16.msra.mxu1 %v9305_v34  ;;  %6765 = vmatprep.mubr.f32.mxu1 %v717_v49  ;;  %v3161_v49 = vsub.f32 %v9348_v56, %v10462_v17  ;;  %v3169_v17 = vand.u32 4294901760, %v3168_v15  ;;  %v772_v15 = vsub.f32 %v9400_v0, %v10467_v29  ;;  %v778_v36 = vand.u32 4294901760, %v9424_v23 }
  0x6c   :  { %8218 = vmatpush3.bf16.msra.mxu0 %v9323_v48  ;;  %7828 = vmatprep.subr.bf16.mxu1 %v9333_v44  ;;  %v751_v53 = vsub.f32 %v9365_v11, %v10463_v43  ;;  %v3175_v43 = vsub.f32 %v9377_v39, %v3174_v5  ;;  %v786_v29 = vsub.f32 %v9426_v19, %v785_v28 }
  0x6d   :  { %8220 = vmatprep.subr.bf16.mxu0 %v9342_v6  ;;  %v3162_v31 = vand.u32 4294901760, %v3161_v49  ;;  %v773_v57 = vand.u32 4294901760, %v772_v15  ;;  %v7863_v15 = vpack.c.bf16 %v9400_v0, %v9398_v61  ;;  %v6035_v61 = vld [vmem:[%s10443_s1 + $0x180] sm:$0xff] }
  0x6e   :  { %v752_v42 = vand.u32 4294901760, %v751_v53  ;;  %v779_v53 = vsub.f32 %v9424_v23, %v778_v36  ;;  %v787_v32 = vand.u32 4294901760, %v786_v29  ;;  %v8247_v29 = vpack.c.bf16 %v9350_v9, %v9348_v56 }
  0x6f   :  { %7830 = vmatpush3.bf16.msra.mxu1 %v9333_v44  ;;  %v8231_v49 = vpack.c.bf16 %v3169_v17, %v3162_v31 }
  0x70   :  { %8222 = vmatpush3.bf16.msra.mxu0 %v9342_v6  ;;  %7832 = vmatprep.subr.bf16.mxu1 %v9371_v25  ;;  %v7843_v62 = vpack.c.bf16 %v759_v55, %v752_v42  ;;  %v7859_v55 = vpack.c.bf16 %v9367_v2, %v9365_v11 }
  0x71   :  { %8224 = vmatprep.subr.bf16.mxu0 %v8223_v35 }
  0x73   :  { %7834 = vmatpush3.bf16.msra.mxu1 %v9371_v25  ;;  %7222 = vmatmul.mubr.f32.vlgmr.msra.gmra.mrb[0].mxu0 %v3123_v20  ;;  %v3176_v20 = vand.u32 4294901760, %v3175_v43  ;;  %v780_v43 = vand.u32 4294901760, %v779_v53  ;;  %v9579_v53 = vld [vmem:[%s10443_s1 + $0x1a0] sm:$0xff] }
  0x74   :  { %8226 = vmatpush3.bf16.msra.mxu0 %v8223_v35  ;;  %7836 = vmatprep.subr.bf16.mxu1 %v9411_v21  ;;  %v766_v35 = vand.u32 4294901760, %v765_v7  ;;  %v8251_v7 = vpack.c.bf16 %v9380_v60, %v9377_v39 }
  0x75   :  { %8228 = vmatprep.subr.bf16.mxu0 %v8227_v30  ;;  %7240 = vmatprep.mubr.f32.mxu0 %v9203_v54  ;;  %v8235_v17 = vpack.c.bf16 %v3183_v37, %v3176_v20  ;;  %v7851_v31 = vpack.c.bf16 %v787_v32, %v780_v43  ;;  %v8271_v20 = vpack.c.bf16 %v3139_v22, %v3132_v33  ;;  %v10499_v37 = vand.u32 4294901760, %v9315_v41 }
  0x76   :  { %v7847_v42 = vpack.c.bf16 %v773_v57, %v766_v35  ;;  %v10502_v22 = vand.u32 4294901760, %v9348_v56  ;;  %v3618_v56 = vld [vmem:[%s10444_s0 + $0xc] sm:$0xff]  ;;  %v3636_v35 = vand.u32 4294901760, %v6035_v61 }
  0x77   :  { %7838 = vmatpush3.bf16.msra.mxu1 %v9411_v21 }
  0x78   :  { %8230 = vmatpush3.bf16.msra.mxu0 %v8227_v30  ;;  %7840 = vmatprep.subr.bf16.mxu1 %v7839_v45  ;;  %v8239_v30 = vpack.c.bf16 %v9265_v63, %v9263_v40  ;;  %v10500_v40 = vand.u32 4294901760, %v9319_v46  ;;  %v10501_v63 = vand.u32 4294901760, %v9329_v4 }
  0x79   :  { %8232 = vmatprep.subr.bf16.mxu0 %v8231_v49 }
  0x7a   :  { %6766 = vmatmul.mubr.f32.vlgmr.msra.gmra.mrb[0].mxu1 %v9312_v38  ;;  %v8243_v38 = vpack.c.bf16 %v9289_v16, %v9287_v18  ;;  %v7887_v33 = vpack.c.bf16 %v10501_v63, %v10500_v40 }
  0x7b   :  { %7842 = vmatpush3.bf16.msra.mxu1 %v7839_v45  ;;  %6784 = vmatprep.mubr.f32.mxu1 %v9222_v47  ;;  %v7855_v45 = vpack.c.bf16 %v9329_v4, %v9319_v46  ;;  %v8283_v4 = vpack.c.bf16 %v3181_v59, %v3174_v5  ;;  %v1222_v5 = vld [vmem:[%s10444_s0 + $0x4] sm:$0xff] }
  0x7c   :  { %8234 = vmatpush3.bf16.msra.mxu0 %v8231_v49  ;;  %7844 = vmatprep.subr.bf16.mxu1 %v7843_v62  ;;  %v7867_v49 = vpack.c.bf16 %v9426_v19, %v9424_v23  ;;  %v1234_v39 = vsel %vm28_vm0, %v1222_v5, 0  ;;  %v6038_v23 = vld [vmem:[%s10443_s1 + $0x198] sm:$0xff] }
  0x7d   :  { %8236 = vmatprep.subr.bf16.mxu0 %v8235_v17  ;;  %v9565_v19 = vand.u32 4294901760, %v1234_v39  ;;  %v3645_v32 = vand.u32 4294901760, %v6038_v23 }
  0x7f   :  { %7846 = vmatpush3.bf16.msra.mxu1 %v7843_v62  ;;  %v10505_v62 = vand.u32 4294901760, %v9367_v2  ;;  %v3630_v2 = vsel %vm28_vm0, %v3618_v56, 0 }
  0x80   :  { %8238 = vmatpush3.bf16.msra.mxu0 %v8235_v17  ;;  %7848 = vmatprep.subr.bf16.mxu1 %v7847_v42  ;;  %v9537_v59 = vand.u32 4294901760, %v3630_v2 }
  0x81   :  { %8240 = vmatprep.subr.bf16.mxu0 %v8239_v30 }
  0x82   :  { %v9548_v60 = vsub.f32 %v3630_v2, %v9537_v59 }
  0x83   :  { %7850 = vmatpush3.bf16.msra.mxu1 %v7847_v42  ;;  %7241 = vmatmul.mubr.f32.vlgmr.msra.gmra.mrb[0].mxu0 %v9285_v51 }
  0x84   :  { %8242 = vmatpush3.bf16.msra.mxu0 %v8239_v30  ;;  %7852 = vmatprep.subr.bf16.mxu1 %v7851_v31  ;;  %v9587_v17 = vand.u32 4294901760, %v9548_v60 }
  0x85   :  { %8244 = vmatprep.subr.bf16.mxu0 %v8243_v38  ;;  %7259 = vmatprep.mubr.f32.mxu0 %v9214_v1 }
  0x87   :  { %7854 = vmatpush3.bf16.msra.mxu1 %v7851_v31 }
  0x88   :  { %8246 = vmatpush3.bf16.msra.mxu0 %v8243_v38  ;;  %7856 = vmatprep.subr.bf16.mxu1 %v7855_v45  ;;  %v9593_v38 = vsub.f32 %v6035_v61, %v3636_v35 }
  0x89   :  { %8248 = vmatprep.subr.bf16.mxu0 %v8247_v29 }
  0x8a   :  { %6785 = vmatmul.mubr.f32.vlgmr.msra.gmra.mrb[0].mxu1 %v9203_v54  ;;  %v3731_v40 = vand.u32 4294901760, %v9593_v38 }
  0x8b   :  { %7858 = vmatpush3.bf16.msra.mxu1 %v7855_v45  ;;  %6803 = vmatprep.mubr.f32.mxu1 %v9250_v10  ;;  %v10498_v10 = vand.u32 4294901760, %v9289_v16  ;;  %v9596_v45 = vsub.f32 %v1234_v39, %v9565_v19 }
  0x8c   :  { %8250 = vmatpush3.bf16.msra.mxu0 %v8247_v29  ;;  %7860 = vmatprep.subr.bf16.mxu1 %v7859_v55  ;;  %v3648_v29 = vand.u32 4294901760, %v9579_v53 }
  0x8d   :  { %8252 = vmatprep.subr.bf16.mxu0 %v8251_v7  ;;  %v1314_v63 = vand.u32 4294901760, %v9596_v45 }
  0x8f   :  { %7862 = vmatpush3.bf16.msra.mxu1 %v7859_v55  ;;  %v1315_v5 = vsub.f32 %v9596_v45, %v1314_v63 }
  0x90   :  { %8254 = vmatpush3.bf16.msra.mxu0 %v8251_v7  ;;  %7864 = vmatprep.subr.bf16.mxu1 %v7863_v15 }
  0x91   :  { %8256 = vmatprep.subr.bf16.mxu0 %v9268_v52 }
  0x93   :  { %7866 = vmatpush3.bf16.msra.mxu1 %v7863_v15  ;;  %7260 = vmatmul.mubr.f32.vlgmr.msra.gmra.mrb[0].mxu0 %v9315_v41  ;;  %v10504_v41 = vand.u32 4294901760, %v9365_v11  ;;  %v3711_v15 = vsub.f32 %v9548_v60, %v9587_v17 }
  0x94   :  { %8258 = vmatpush3.bf16.msra.mxu0 %v9268_v52  ;;  %7868 = vmatprep.subr.bf16.mxu1 %v7867_v49 }
  0x95   :  { %8260 = vmatprep.subr.bf16.mxu0 %v9295_v27  ;;  %7278 = vmatprep.mubr.f32.mxu0 %v9237_v58  ;;  %v7891_v46 = vpack.c.bf16 %v10505_v62, %v10504_v41 }
  0x97   :  { %7870 = vmatpush3.bf16.msra.mxu1 %v7867_v49  ;;  %v6006_v49 = vld [vmem:[%s10443_s1 + $0x98] sm:$0xff] }
  0x98   :  { %8262 = vmatpush3.bf16.msra.mxu0 %v9295_v27  ;;  %7872 = vmatprep.subr.bf16.mxu1 %v9305_v34  ;;  %v1249_v41 = vand.u32 4294901760, %v6006_v49 }
  0x99   :  { %8264 = vmatprep.subr.bf16.mxu0 %v9323_v48 }
  0x9a   :  { %6804 = vmatmul.mubr.f32.vlgmr.msra.gmra.mrb[0].mxu1 %v9214_v1  ;;  %v10497_v1 = vand.u32 4294901760, %v9287_v18  ;;  %v10503_v18 = vand.u32 4294901760, %v9350_v9  ;;  %v10506_v9 = vand.u32 4294901760, %v9400_v0  ;;  %v6036_v0 = vld [vmem:[%s10443_s1 + $0x188] sm:$0xff] }
  0x9b   :  { %7874 = vmatpush3.bf16.msra.mxu1 %v9305_v34  ;;  %6822 = vmatprep.mubr.f32.mxu1 %v715_v26  ;;  %v3639_v57 = vand.u32 4294901760, %v6036_v0 }
  0x9c   :  { %8266 = vmatpush3.bf16.msra.mxu0 %v9323_v48  ;;  %7876 = vmatprep.subr.bf16.mxu1 %v9333_v44  ;;  %v8275_v26 = vpack.c.bf16 %v10498_v10, %v10497_v1  ;;  %v8279_v16 = vpack.c.bf16 %v10503_v18, %v10502_v22  ;;  %v7895_v11 = vpack.c.bf16 %v10506_v9, %v764_v24  ;;  %v6037_v24 = vld [vmem:[%s10443_s1 + $0x190] sm:$0xff] }
  0x9d   :  { %8268 = vmatprep.subr.bf16.mxu0 %v9342_v6  ;;  %v3642_v43 = vand.u32 4294901760, %v6037_v24  ;;  %v9602_v7 = vsub.f32 %v6036_v0, %v3639_v57  ;;  %v9622_v10 = vsub.f32 %v6038_v23, %v3645_v32 }
  0x9f   :  { %7878 = vmatpush3.bf16.msra.mxu1 %v9333_v44  ;;  %v9620_v1 = vsub.f32 %v6037_v24, %v3642_v43  ;;  %v9676_v24 = vsub.f32 %v9579_v53, %v3648_v29  ;;  %v6009_v53 = vld [vmem:[%s10443_s1 + $0xb0] sm:$0xff] }
  0xa0   :  { %8270 = vmatpush3.bf16.msra.mxu0 %v9342_v6  ;;  %7880 = vmatprep.subr.bf16.mxu1 %v9371_v25 }
  0xa1   :  { %8272 = vmatprep.subr.bf16.mxu0 %v8271_v20  ;;  %v10476_v9 = vand.u32 4294901760, %v9620_v1 }
  0xa3   :  { %7882 = vmatpush3.bf16.msra.mxu1 %v9371_v25  ;;  %7279 = vmatmul.mubr.f32.vlgmr.msra.gmra.mrb[0].mxu0 %v10499_v37  ;;  %v6042_v37 = vld [vmem:[%s10443_s1 + $0x1b8] sm:$0xff] }
  0xa4   :  { %8274 = vmatpush3.bf16.msra.mxu0 %v8271_v20  ;;  %7884 = vmatprep.subr.bf16.mxu1 %v9411_v21  ;;  %v6041_v20 = vld [vmem:[%s10443_s1 + $0x1b0] sm:$0xff]  ;;  %v3657_v56 = vand.u32 4294901760, %v6042_v37 }
  0xa5   :  { %8276 = vmatprep.subr.bf16.mxu0 %v8275_v26  ;;  %7297 = vmatprep.mubr.f32.mxu0 %v9203_v54  ;;  %v3654_v62 = vand.u32 4294901760, %v6041_v20 }
  0xa7   :  { %7886 = vmatpush3.bf16.msra.mxu1 %v9411_v21 }
  0xa8   :  { %8278 = vmatpush3.bf16.msra.mxu0 %v8275_v26  ;;  %7888 = vmatprep.subr.bf16.mxu1 %v7887_v33  ;;  %v9625_v26 = vpack.c.bf16 %v3645_v32, %v3642_v43 }
  0xa9   :  { %8280 = vmatprep.subr.bf16.mxu0 %v8279_v16 }
  0xaa   :  { %6823 = vmatmul.mubr.f32.vlgmr.msra.gmra.mrb[0].mxu1 %v9237_v58  ;;  %v7899_v58 = vpack.c.bf16 %v785_v28, %v778_v36  ;;  %v6003_v36 = vld [vmem:[%s10443_s1 + $0x80] sm:$0xff]  ;;  %v6004_v28 = vld [vmem:[%s10443_s1 + $0x88] sm:$0xff] }
  0xab   :  { %7890 = vmatpush3.bf16.msra.mxu1 %v7887_v33  ;;  %6841 = vmatprep.mubr.f32.mxu1 %v9222_v47  ;;  %v1240_v30 = vand.u32 4294901760, %v6003_v36  ;;  %v1243_v31 = vand.u32 4294901760, %v6004_v28 }
  0xac   :  { %8282 = vmatpush3.bf16.msra.mxu0 %v8279_v16  ;;  %7892 = vmatprep.subr.bf16.mxu1 %v7891_v46 }
  0xad   :  { %8284 = vmatprep.subr.bf16.mxu0 %v8283_v4  ;;  %v9634_v33 = vpack.c.bf16 %v1243_v31, %v1240_v30  ;;  %v9653_v2 = vsub.f32 %v6003_v36, %v1240_v30  ;;  %v9663_v39 = vsub.f32 %v6004_v28, %v1243_v31  ;;  %v9681_v36 = vpack.c.bf16 %v3657_v56, %v3654_v62 }
  0xae   :  { %v3746_v28 = vsub.f32 %v9620_v1, %v10476_v9  ;;  %v9700_v30 = vsub.f32 %v6006_v49, %v1249_v41  ;;  %v9712_v49 = vsub.f32 %v6041_v20, %v3654_v62 }
  0xaf   :  { %7894 = vmatpush3.bf16.msra.mxu1 %v7891_v46  ;;  %v6008_v46 = vld [vmem:[%s10443_s1 + $0xa8] sm:$0xff]  ;;  %v10469_v43 = vand.u32 4294901760, %v9663_v39 }
  0xb0   :  { %8286 = vmatpush3.bf16.msra.mxu0 %v8283_v4  ;;  %7896 = vmatprep.subr.bf16.mxu1 %v7895_v11  ;;  %v9649_v4 = vand.u32 4294901760, %v3711_v15  ;;  %v1255_v0 = vand.u32 4294901760, %v6008_v46  ;;  %v10475_v15 = vand.u32 4294901760, %v9676_v24  ;;  %v10474_v62 = vand.u32 4294901760, %v9700_v30 }
  0xb1   :  { %8288 = vmatprep.subr.bf16.mxu0 %v9268_v52  ;;  %v1343_v20 = vsub.f32 %v9663_v39, %v10469_v43  ;;  %v3773_v43 = vand.u32 4294901760, %v9712_v49 }
  0xb3   :  { %7898 = vmatpush3.bf16.msra.mxu1 %v7895_v11  ;;  %7298 = vmatmul.mubr.f32.vlgmr.msra.gmra.mrb[0].mxu0 %v9285_v51  ;;  %v10471_v11 = vand.u32 4294901760, %v9622_v10 }
  0xb4   :  { %8290 = vmatpush3.bf16.msra.mxu0 %v9268_v52  ;;  %7900 = vmatprep.subr.bf16.mxu1 %v7899_v58  ;;  %v3619_v52 = vld [vmem:[%s10444_s0 + $0x14] sm:$0xff] }
  0xb5   :  { %8292 = vmatprep.subr.bf16.mxu0 %v9295_v27  ;;  %7316 = vmatprep.mubr.f32.mxu0 %v9203_v54  ;;  %v3633_v42 = vsel %vm28_vm0, %v3619_v52, 0 }
  0xb7   :  { %7902 = vmatpush3.bf16.msra.mxu1 %v7899_v58  ;;  %v3732_v58 = vsub.f32 %v9593_v38, %v3731_v40 }
  0xb8   :  { %8294 = vmatpush3.bf16.msra.mxu0 %v9295_v27  ;;  %7904 = vmatprep.subr.bf16.mxu1 %v9305_v34  ;;  %v9584_v27 = vld [vmem:[%s10443_s1 + $0x1a8] sm:$0xff] }
  0xb9   :  { %8296 = vmatprep.subr.bf16.mxu0 %v9323_v48  ;;  %v3651_v55 = vand.u32 4294901760, %v9584_v27  ;;  %v3733_v31 = vand.u32 4294901760, %v3732_v58  ;;  %v3747_v58 = vand.u32 4294901760, %v3746_v28  ;;  %v9730_v28 = vsub.f32 %v6008_v46, %v1255_v0 }
  0xba   :  { %6842 = vmatmul.mubr.f32.vlgmr.msra.gmra.mrb[0].mxu1 %v9203_v54 }
  0xbb   :  { %7906 = vmatpush3.bf16.msra.mxu1 %v9305_v34  ;;  %6860 = vmatprep.mubr.f32.mxu1 %v9222_v47  ;;  %v9604_v34 = vand.u32 4294901760, %v3633_v42  ;;  %v9607_v47 = vpack.c.bf16 %v3639_v57, %v3636_v35  ;;  %v9636_v22 = vpack.c.bf16 %v3651_v55, %v3648_v29  ;;  %v9679_v23 = vsub.f32 %v9584_v27, %v3651_v55  ;;  %v6010_v27 = vld [vmem:[%s10443_s1 + $0xb8] sm:$0xff] }
  0xbc   :  { %8298 = vmatpush3.bf16.msra.mxu0 %v9323_v48  ;;  %7908 = vmatprep.subr.bf16.mxu1 %v9333_v44  ;;  %v6005_v48 = vld [vmem:[%s10443_s1 + $0x90] sm:$0xff]  ;;  %v3753_v35 = vsub.f32 %v9622_v10, %v10471_v11  ;;  %v10470_v57 = vand.u32 4294901760, %v9653_v2 }
  0xbd   :  { %8300 = vmatprep.subr.bf16.mxu0 %v9342_v6  ;;  %v9640_v18 = vsub.f32 %v3633_v42, %v9604_v34  ;;  %v1246_v16 = vand.u32 4294901760, %v6005_v48  ;;  %v1316_v42 = vand.u32 4294901760, %v1315_v5  ;;  %v1261_v5 = vand.u32 4294901760, %v6010_v27 }
  0xbf   :  { %7910 = vmatpush3.bf16.msra.mxu1 %v9333_v44  ;;  %v3738_v44 = vand.u32 4294901760, %v9602_v7  ;;  %v9672_v52 = vpack.c.bf16 %v1249_v41, %v1246_v16  ;;  %v9698_v32 = vsub.f32 %v6005_v48, %v1246_v16  ;;  %v10472_v48 = vand.u32 4294901760, %v9679_v23 }
  0xc0   :  { %8302 = vmatpush3.bf16.msra.mxu0 %v9342_v6  ;;  %7912 = vmatprep.subr.bf16.mxu1 %v9371_v25  ;;  %v6007_v6 = vld [vmem:[%s10443_s1 + $0xa0] sm:$0xff]  ;;  %v9714_v16 = vsub.f32 %v6042_v37, %v3657_v56  ;;  %v1258_v41 = vand.u32 4294901760, %v6009_v53 }
  0xc1   :  { %8304 = vmatprep.subr.bf16.mxu0 %v9607_v47  ;;  %v1252_v61 = vand.u32 4294901760, %v6007_v6  ;;  %v10473_v37 = vand.u32 4294901760, %v9698_v32 }
  0xc3   :  { %7914 = vmatpush3.bf16.msra.mxu1 %v9371_v25  ;;  %7317 = vmatmul.mubr.f32.vlgmr.msra.gmra.mrb[0].mxu0 %v9285_v51  ;;  %v3739_v51 = vsub.f32 %v9602_v7, %v3738_v44  ;;  %v10468_v25 = vand.u32 4294901760, %v9640_v18  ;;  %v9728_v56 = vsub.f32 %v6007_v6, %v1252_v61 }
  0xc4   :  { %8306 = vmatpush3.bf16.msra.mxu0 %v9607_v47  ;;  %7916 = vmatprep.subr.bf16.mxu1 %v9411_v21 }
  0xc5   :  { %8308 = vmatprep.subr.bf16.mxu0 %v9625_v26  ;;  %7335 = vmatprep.mubr.f32.mxu0 %v9649_v4  ;;  %v3740_v29 = vand.u32 4294901760, %v3739_v51  ;;  %v3721_v55 = vsub.f32 %v9640_v18, %v10468_v25  ;;  %v3754_v51 = vand.u32 4294901760, %v3753_v35  ;;  %v1336_v25 = vsub.f32 %v9653_v2, %v10470_v57 }
  0xc6   :  { %v3760_v35 = vsub.f32 %v9676_v24, %v10475_v15  ;;  %v3780_v57 = vand.u32 4294901760, %v9714_v16 }
  0xc7   :  { %7918 = vmatpush3.bf16.msra.mxu1 %v9411_v21  ;;  %v9704_v21 = vpack.c.bf16 %v1255_v0, %v1252_v61  ;;  %v3722_v11 = vand.u32 4294901760, %v3721_v55  ;;  %v8323_v6 = vpack.c.bf16 %v3754_v51, %v3747_v58  ;;  %v1337_v46 = vand.u32 4294901760, %v1336_v25 }
  0xc8   :  { %8310 = vmatpush3.bf16.msra.mxu0 %v9625_v26  ;;  %7920 = vmatprep.subr.bf16.mxu1 %v9634_v33  ;;  %v1344_v61 = vand.u32 4294901760, %v1343_v20  ;;  %v1350_v0 = vsub.f32 %v9698_v32, %v10473_v37  ;;  %v1363_v55 = vand.u32 4294901760, %v9728_v56  ;;  %v10477_v58 = vand.u32 4294901760, %v9730_v28 }
  0xc9   :  { %8312 = vmatprep.subr.bf16.mxu0 %v9636_v22  ;;  %v9754_v51 = vsub.f32 %v6009_v53, %v1258_v41  ;;  %v9756_v25 = vsub.f32 %v6010_v27, %v1261_v5  ;;  %v3761_v20 = vand.u32 4294901760, %v3760_v35  ;;  %v3774_v37 = vsub.f32 %v9712_v49, %v3773_v43 }
  0xca   :  { %6861 = vmatmul.mubr.f32.vlgmr.msra.gmra.mrb[0].mxu1 %v9203_v54  ;;  %v8319_v54 = vpack.c.bf16 %v3740_v29, %v3733_v31  ;;  %v9741_v31 = vpack.c.bf16 %v1261_v5, %v1258_v41  ;;  %v1357_v29 = vsub.f32 %v9700_v30, %v10474_v62  ;;  %v3781_v62 = vsub.f32 %v9714_v16, %v3780_v57 }
  0xcb   :  { %7922 = vmatpush3.bf16.msra.mxu1 %v9634_v33  ;;  %6879 = vmatprep.mubr.f32.mxu1 %v1316_v42  ;;  %v3767_v42 = vsub.f32 %v9679_v23, %v10472_v48  ;;  %v7935_v15 = vpack.c.bf16 %v1344_v61, %v1337_v46  ;;  %v1351_v9 = vand.u32 4294901760, %v1350_v0  ;;  %v1364_v27 = vsub.f32 %v9728_v56, %v1363_v55 }
  0xcc   :  { %8314 = vmatpush3.bf16.msra.mxu0 %v9636_v22  ;;  %7924 = vmatprep.subr.bf16.mxu1 %v9672_v52  ;;  %v1358_v53 = vand.u32 4294901760, %v1357_v29  ;;  %v1371_v41 = vsub.f32 %v9730_v28, %v10477_v58  ;;  %v1377_v5 = vand.u32 4294901760, %v9754_v51  ;;  %v1384_v35 = vand.u32 4294901760, %v9756_v25 }
  0xcd   :  { %8316 = vmatprep.subr.bf16.mxu0 %v9681_v36  ;;  %v3768_v48 = vand.u32 4294901760, %v3767_v42  ;;  %v3775_v42 = vand.u32 4294901760, %v3774_v37  ;;  %v3782_v46 = vand.u32 4294901760, %v3781_v62  ;;  %v1365_v61 = vand.u32 4294901760, %v1364_v27 }
  0xce   :  { %v1372_v0 = vand.u32 4294901760, %v1371_v41  ;;  %v1378_v29 = vsub.f32 %v9754_v51, %v1377_v5  ;;  %v1385_v58 = vsub.f32 %v9756_v25, %v1384_v35  ;;  %v8347_v27 = vpack.c.bf16 %v9714_v16, %v9712_v49 }
  0xcf   :  { %7926 = vmatpush3.bf16.msra.mxu1 %v9672_v52  ;;  %v7959_v41 = vpack.c.bf16 %v9730_v28, %v9728_v56  ;;  %v6043_v56 = vld [vmem:[%s10443_s1 + $0x1c0] sm:$0xff] }
  0xd0   :  { %8318 = vmatpush3.bf16.msra.mxu0 %v9681_v36  ;;  %7928 = vmatprep.subr.bf16.mxu1 %v9704_v21  ;;  %v1379_v37 = vand.u32 4294901760, %v1378_v29  ;;  %v1386_v62 = vand.u32 4294901760, %v1385_v58  ;;  %v8343_v58 = vpack.c.bf16 %v9679_v23, %v9676_v24  ;;  %v9909_v29 = vld [vmem:[%s10443_s1 + $0x1e0] sm:$0xff] }
  0xd1   :  { %8320 = vmatprep.subr.bf16.mxu0 %v8319_v54 }
  0xd3   :  { %7930 = vmatpush3.bf16.msra.mxu1 %v9704_v21  ;;  %7336 = vmatmul.mubr.f32.vlgmr.msra.gmra.mrb[0].mxu0 %v3722_v11  ;;  %v8327_v11 = vpack.c.bf16 %v3768_v48, %v3761_v20  ;;  %v8331_v48 = vpack.c.bf16 %v3782_v46, %v3775_v42  ;;  %v7947_v20 = vpack.c.bf16 %v1386_v62, %v1379_v37  ;;  %v10509_v46 = vand.u32 4294901760, %v9640_v18 }
  0xd4   :  { %8322 = vmatpush3.bf16.msra.mxu0 %v8319_v54  ;;  %7932 = vmatprep.subr.bf16.mxu1 %v9741_v31  ;;  %v7939_v54 = vpack.c.bf16 %v1358_v53, %v1351_v9  ;;  %v7943_v9 = vpack.c.bf16 %v1372_v0, %v1365_v61  ;;  %v7955_v53 = vpack.c.bf16 %v9700_v30, %v9698_v32  ;;  %v4235_v61 = vand.u32 4294901760, %v6043_v56 }
  0xd5   :  { %8324 = vmatprep.subr.bf16.mxu0 %v8323_v6  ;;  %7354 = vmatprep.mubr.f32.mxu0 %v9537_v59  ;;  %v8367_v42 = vpack.c.bf16 %v3738_v44, %v3731_v40  ;;  %v10512_v44 = vand.u32 4294901760, %v9676_v24  ;;  %v4217_v24 = vld [vmem:[%s10444_s0 + $0xe] sm:$0xff] }
  0xd7   :  { %7934 = vmatpush3.bf16.msra.mxu1 %v9741_v31 }
  0xd8   :  { %8326 = vmatpush3.bf16.msra.mxu0 %v8323_v6  ;;  %7936 = vmatprep.subr.bf16.mxu1 %v7935_v15  ;;  %v8335_v6 = vpack.c.bf16 %v9602_v7, %v9593_v38  ;;  %v10510_v38 = vand.u32 4294901760, %v9653_v2  ;;  %v10511_v7 = vand.u32 4294901760, %v9663_v39 }
  0xd9   :  { %8328 = vmatprep.subr.bf16.mxu0 %v8327_v11 }
  0xda   :  { %6880 = vmatmul.mubr.f32.vlgmr.msra.gmra.mrb[0].mxu1 %v9649_v4  ;;  %v8339_v4 = vpack.c.bf16 %v9622_v10, %v9620_v1  ;;  %v7983_v40 = vpack.c.bf16 %v10511_v7, %v10510_v38 }
  0xdb   :  { %7938 = vmatpush3.bf16.msra.mxu1 %v7935_v15  ;;  %6898 = vmatprep.mubr.f32.mxu1 %v9565_v19  ;;  %v7951_v15 = vpack.c.bf16 %v9663_v39, %v9653_v2  ;;  %v8379_v39 = vpack.c.bf16 %v3780_v57, %v3773_v43  ;;  %v1821_v43 = vld [vmem:[%s10444_s0 + $0x6] sm:$0xff] }
  0xdc   :  { %8330 = vmatpush3.bf16.msra.mxu0 %v8327_v11  ;;  %7940 = vmatprep.subr.bf16.mxu1 %v7939_v54  ;;  %v7963_v11 = vpack.c.bf16 %v9756_v25, %v9754_v51  ;;  %v1833_v49 = vsel %vm28_vm0, %v1821_v43, 0  ;;  %v6046_v51 = vld [vmem:[%s10443_s1 + $0x1d8] sm:$0xff] }
  0xdd   :  { %8332 = vmatprep.subr.bf16.mxu0 %v8331_v48  ;;  %v9895_v25 = vand.u32 4294901760, %v1833_v49  ;;  %v4244_v62 = vand.u32 4294901760, %v6046_v51 }
  0xdf   :  { %7942 = vmatpush3.bf16.msra.mxu1 %v7939_v54  ;;  %v10515_v54 = vand.u32 4294901760, %v9700_v30  ;;  %v4229_v30 = vsel %vm28_vm0, %v4217_v24, 0 }
  0xe0   :  { %8334 = vmatpush3.bf16.msra.mxu0 %v8331_v48  ;;  %7944 = vmatprep.subr.bf16.mxu1 %v7943_v9  ;;  %v9867_v57 = vand.u32 4294901760, %v4229_v30 }
  0xe1   :  { %8336 = vmatprep.subr.bf16.mxu0 %v8335_v6 }
  0xe2   :  { %v9878_v16 = vsub.f32 %v4229_v30, %v9867_v57 }
  0xe3   :  { %7946 = vmatpush3.bf16.msra.mxu1 %v7943_v9  ;;  %7355 = vmatmul.mubr.f32.vlgmr.msra.gmra.mrb[0].mxu0 %v9604_v34 }
  0xe4   :  { %8338 = vmatpush3.bf16.msra.mxu0 %v8335_v6  ;;  %7948 = vmatprep.subr.bf16.mxu1 %v7947_v20  ;;  %v9917_v48 = vand.u32 4294901760, %v9878_v16 }
  0xe5   :  { %8340 = vmatprep.subr.bf16.mxu0 %v8339_v4  ;;  %7373 = vmatprep.mubr.f32.mxu0 %v9548_v60 }
  0xe7   :  { %7950 = vmatpush3.bf16.msra.mxu1 %v7947_v20 }
  0xe8   :  { %8342 = vmatpush3.bf16.msra.mxu0 %v8339_v4  ;;  %7952 = vmatprep.subr.bf16.mxu1 %v7951_v15  ;;  %v9923_v4 = vsub.f32 %v6043_v56, %v4235_v61 }
  0xe9   :  { %8344 = vmatprep.subr.bf16.mxu0 %v8343_v58 }
  0xea   :  { %6899 = vmatmul.mubr.f32.vlgmr.msra.gmra.mrb[0].mxu1 %v9537_v59  ;;  %v4330_v38 = vand.u32 4294901760, %v9923_v4 }
  0xeb   :  { %7954 = vmatpush3.bf16.msra.mxu1 %v7951_v15  ;;  %6917 = vmatprep.mubr.f32.mxu1 %v9596_v45  ;;  %v10508_v45 = vand.u32 4294901760, %v9622_v10  ;;  %v9926_v15 = vsub.f32 %v1833_v49, %v9895_v25 }
  0xec   :  { %8346 = vmatpush3.bf16.msra.mxu0 %v8343_v58  ;;  %7956 = vmatprep.subr.bf16.mxu1 %v7955_v53  ;;  %v4247_v58 = vand.u32 4294901760, %v9909_v29 }
  0xed   :  { %8348 = vmatprep.subr.bf16.mxu0 %v8347_v27  ;;  %v1913_v7 = vand.u32 4294901760, %v9926_v15 }
  0xef   :  { %7958 = vmatpush3.bf16.msra.mxu1 %v7955_v53  ;;  %v1914_v43 = vsub.f32 %v9926_v15, %v1913_v7 }
  0xf0   :  { %8350 = vmatpush3.bf16.msra.mxu0 %v8347_v27  ;;  %7960 = vmatprep.subr.bf16.mxu1 %v7959_v41 }
  0xf1   :  { %8352 = vmatprep.subr.bf16.mxu0 %v9607_v47 }
  0xf3   :  { %7962 = vmatpush3.bf16.msra.mxu1 %v7959_v41  ;;  %7374 = vmatmul.mubr.f32.vlgmr.msra.gmra.mrb[0].mxu0 %v9640_v18  ;;  %v10514_v18 = vand.u32 4294901760, %v9698_v32  ;;  %v4310_v41 = vsub.f32 %v9878_v16, %v9917_v48 }
  0xf4   :  { %8354 = vmatpush3.bf16.msra.mxu0 %v9607_v47  ;;  %7964 = vmatprep.subr.bf16.mxu1 %v7963_v11 }
  0xf5   :  { %8356 = vmatprep.subr.bf16.mxu0 %v9625_v26  ;;  %7392 = vmatprep.mubr.f32.mxu0 %v9587_v17  ;;  %v7987_v2 = vpack.c.bf16 %v10515_v54, %v10514_v18 }
  0xf7   :  { %7966 = vmatpush3.bf16.msra.mxu1 %v7963_v11  ;;  %v6014_v11 = vld [vmem:[%s10443_s1 + $0xd8] sm:$0xff] }
  0xf8   :  { %8358 = vmatpush3.bf16.msra.mxu0 %v9625_v26  ;;  %7968 = vmatprep.subr.bf16.mxu1 %v9634_v33  ;;  %v1848_v18 = vand.u32 4294901760, %v6014_v11 }
  0xf9   :  { %8360 = vmatprep.subr.bf16.mxu0 %v9636_v22 }
  0xfa   :  { %6918 = vmatmul.mubr.f32.vlgmr.msra.gmra.mrb[0].mxu1 %v9548_v60  ;;  %v10507_v60 = vand.u32 4294901760, %v9620_v1  ;;  %v10513_v1 = vand.u32 4294901760, %v9679_v23  ;;  %v10516_v23 = vand.u32 4294901760, %v9730_v28  ;;  %v6044_v28 = vld [vmem:[%s10443_s1 + $0x1c8] sm:$0xff] }
  0xfb   :  { %7970 = vmatpush3.bf16.msra.mxu1 %v9634_v33  ;;  %6936 = vmatprep.mubr.f32.mxu1 %v1314_v63  ;;  %v4238_v0 = vand.u32 4294901760, %v6044_v28 }
  0xfc   :  { %8362 = vmatpush3.bf16.msra.mxu0 %v9636_v22  ;;  %7972 = vmatprep.subr.bf16.mxu1 %v9672_v52  ;;  %v8371_v63 = vpack.c.bf16 %v10508_v45, %v10507_v60  ;;  %v8375_v10 = vpack.c.bf16 %v10513_v1, %v10512_v44  ;;  %v7991_v32 = vpack.c.bf16 %v10516_v23, %v1363_v55  ;;  %v6045_v55 = vld [vmem:[%s10443_s1 + $0x1d0] sm:$0xff] }
  0xfd   :  { %8364 = vmatprep.subr.bf16.mxu0 %v9681_v36  ;;  %v4241_v37 = vand.u32 4294901760, %v6045_v55  ;;  %v9932_v27 = vsub.f32 %v6044_v28, %v4238_v0  ;;  %v9952_v45 = vsub.f32 %v6046_v51, %v4244_v62 }
  0xff   :  { %7974 = vmatpush3.bf16.msra.mxu1 %v9672_v52  ;;  %v9950_v60 = vsub.f32 %v6045_v55, %v4241_v37  ;;  %v10006_v55 = vsub.f32 %v9909_v29, %v4247_v58  ;;  %v6017_v29 = vld [vmem:[%s10443_s1 + $0xf0] sm:$0xff] }
 0x100   :  { %8366 = vmatpush3.bf16.msra.mxu0 %v9681_v36  ;;  %7976 = vmatprep.subr.bf16.mxu1 %v9704_v21 }
 0x101   :  { %8368 = vmatprep.subr.bf16.mxu0 %v8367_v42  ;;  %v10486_v23 = vand.u32 4294901760, %v9950_v60 }
 0x103   :  { %7978 = vmatpush3.bf16.msra.mxu1 %v9704_v21  ;;  %7393 = vmatmul.mubr.f32.vlgmr.msra.gmra.mrb[0].mxu0 %v10509_v46  ;;  %v6050_v46 = vld [vmem:[%s10443_s1 + $0x1f8] sm:$0xff] }
 0x104   :  { %8370 = vmatpush3.bf16.msra.mxu0 %v8367_v42  ;;  %7980 = vmatprep.subr.bf16.mxu1 %v9741_v31  ;;  %v6049_v42 = vld [vmem:[%s10443_s1 + $0x1f0] sm:$0xff]  ;;  %v4256_v24 = vand.u32 4294901760, %v6050_v46 }
 0x105   :  { %8372 = vmatprep.subr.bf16.mxu0 %v8371_v63  ;;  %7411 = vmatprep.mubr.f32.mxu0 %v9537_v59  ;;  %v4253_v54 = vand.u32 4294901760, %v6049_v42 }
 0x107   :  { %7982 = vmatpush3.bf16.msra.mxu1 %v9741_v31 }
 0x108   :  { %8374 = vmatpush3.bf16.msra.mxu0 %v8371_v63  ;;  %7984 = vmatprep.subr.bf16.mxu1 %v7983_v40  ;;  %v9955_v63 = vpack.c.bf16 %v4244_v62, %v4241_v37 }
 0x109   :  { %8376 = vmatprep.subr.bf16.mxu0 %v8375_v10 }
 0x10a   :  { %6937 = vmatmul.mubr.f32.vlgmr.msra.gmra.mrb[0].mxu1 %v9587_v17  ;;  %v7995_v17 = vpack.c.bf16 %v1384_v35, %v1377_v5  ;;  %v6011_v5 = vld [vmem:[%s10443_s1 + $0xc0] sm:$0xff]  ;;  %v6012_v35 = vld [vmem:[%s10443_s1 + $0xc8] sm:$0xff] }
 0x10b   :  { %7986 = vmatpush3.bf16.msra.mxu1 %v7983_v40  ;;  %6955 = vmatprep.mubr.f32.mxu1 %v9565_v19  ;;  %v1839_v6 = vand.u32 4294901760, %v6011_v5  ;;  %v1842_v20 = vand.u32 4294901760, %v6012_v35 }
 0x10c   :  { %8378 = vmatpush3.bf16.msra.mxu0 %v8375_v10  ;;  %7988 = vmatprep.subr.bf16.mxu1 %v7987_v2 }
 0x10d   :  { %8380 = vmatprep.subr.bf16.mxu0 %v8379_v39  ;;  %v9964_v40 = vpack.c.bf16 %v1842_v20, %v1839_v6  ;;  %v9983_v30 = vsub.f32 %v6011_v5, %v1839_v6  ;;  %v9993_v49 = vsub.f32 %v6012_v35, %v1842_v20  ;;  %v10011_v5 = vpack.c.bf16 %v4256_v24, %v4253_v54 }
 0x10e   :  { %v4345_v35 = vsub.f32 %v9950_v60, %v10486_v23  ;;  %v10030_v6 = vsub.f32 %v6014_v11, %v1848_v18  ;;  %v10042_v11 = vsub.f32 %v6049_v42, %v4253_v54 }
 0x10f   :  { %7990 = vmatpush3.bf16.msra.mxu1 %v7987_v2  ;;  %v6016_v2 = vld [vmem:[%s10443_s1 + $0xe8] sm:$0xff]  ;;  %v10479_v37 = vand.u32 4294901760, %v9993_v49 }
 0x110   :  { %8382 = vmatpush3.bf16.msra.mxu0 %v8379_v39  ;;  %7992 = vmatprep.subr.bf16.mxu1 %v7991_v32  ;;  %v9979_v39 = vand.u32 4294901760, %v4310_v41  ;;  %v1854_v28 = vand.u32 4294901760, %v6016_v2  ;;  %v10485_v41 = vand.u32 4294901760, %v10006_v55  ;;  %v10484_v54 = vand.u32 4294901760, %v10030_v6 }
 0x111   :  { %8384 = vmatprep.subr.bf16.mxu0 %v9607_v47  ;;  %v1942_v42 = vsub.f32 %v9993_v49, %v10479_v37  ;;  %v4372_v37 = vand.u32 4294901760, %v10042_v11 }
 0x113   :  { %7994 = vmatpush3.bf16.msra.mxu1 %v7991_v32  ;;  %7412 = vmatmul.mubr.f32.vlgmr.msra.gmra.mrb[0].mxu0 %v9604_v34  ;;  %v10481_v32 = vand.u32 4294901760, %v9952_v45 }
 0x114   :  { %8386 = vmatpush3.bf16.msra.mxu0 %v9607_v47  ;;  %7996 = vmatprep.subr.bf16.mxu1 %v7995_v17  ;;  %v4218_v47 = vld [vmem:[%s10444_s0 + $0x16] sm:$0xff] }
 0x115   :  { %8388 = vmatprep.subr.bf16.mxu0 %v9625_v26  ;;  %7430 = vmatprep.mubr.f32.mxu0 %v9537_v59  ;;  %v4232_v9 = vsel %vm28_vm0, %v4218_v47, 0 }
 0x117   :  { %7998 = vmatpush3.bf16.msra.mxu1 %v7995_v17  ;;  %v4331_v17 = vsub.f32 %v9923_v4, %v4330_v38 }
 0x118   :  { %8390 = vmatpush3.bf16.msra.mxu0 %v9625_v26  ;;  %8000 = vmatprep.subr.bf16.mxu1 %v9634_v33  ;;  %v9914_v26 = vld [vmem:[%s10443_s1 + $0x1e8] sm:$0xff] }
 0x119   :  { %8392 = vmatprep.subr.bf16.mxu0 %v9636_v22  ;;  %v4250_v53 = vand.u32 4294901760, %v9914_v26  ;;  %v4332_v20 = vand.u32 4294901760, %v4331_v17  ;;  %v4346_v17 = vand.u32 4294901760, %v4345_v35  ;;  %v10060_v35 = vsub.f32 %v6016_v2, %v1854_v28 }
 0x11a   :  { %6956 = vmatmul.mubr.f32.vlgmr.msra.gmra.mrb[0].mxu1 %v9537_v59 }
 0x11b   :  { %8002 = vmatpush3.bf16.msra.mxu1 %v9634_v33  ;;  %6974 = vmatprep.mubr.f32.mxu1 %v9565_v19  ;;  %v9934_v33 = vand.u32 4294901760, %v4232_v9  ;;  %v9937_v19 = vpack.c.bf16 %v4238_v0, %v4235_v61  ;;  %v9966_v44 = vpack.c.bf16 %v4250_v53, %v4247_v58  ;;  %v10009_v51 = vsub.f32 %v9914_v26, %v4250_v53  ;;  %v6018_v26 = vld [vmem:[%s10443_s1 + $0xf8] sm:$0xff] }
 0x11c   :  { %8394 = vmatpush3.bf16.msra.mxu0 %v9636_v22  ;;  %8004 = vmatprep.subr.bf16.mxu1 %v9672_v52  ;;  %v6013_v22 = vld [vmem:[%s10443_s1 + $0xd0] sm:$0xff]  ;;  %v4352_v61 = vsub.f32 %v9952_v45, %v10481_v32  ;;  %v10480_v0 = vand.u32 4294901760, %v9983_v30 }
 0x11d   :  { %8396 = vmatprep.subr.bf16.mxu0 %v9681_v36  ;;  %v9970_v1 = vsub.f32 %v4232_v9, %v9934_v33  ;;  %v1845_v10 = vand.u32 4294901760, %v6013_v22  ;;  %v1915_v9 = vand.u32 4294901760, %v1914_v43  ;;  %v1860_v43 = vand.u32 4294901760, %v6018_v26 }
 0x11f   :  { %8006 = vmatpush3.bf16.msra.mxu1 %v9672_v52  ;;  %v4337_v52 = vand.u32 4294901760, %v9932_v27  ;;  %v10002_v47 = vpack.c.bf16 %v1848_v18, %v1845_v10  ;;  %v10028_v62 = vsub.f32 %v6013_v22, %v1845_v10  ;;  %v10482_v22 = vand.u32 4294901760, %v10009_v51 }
 0x120   :  { %8398 = vmatpush3.bf16.msra.mxu0 %v9681_v36  ;;  %8008 = vmatprep.subr.bf16.mxu1 %v9704_v21  ;;  %v6015_v36 = vld [vmem:[%s10443_s1 + $0xe0] sm:$0xff]  ;;  %v10044_v10 = vsub.f32 %v6050_v46, %v4256_v24  ;;  %v1857_v18 = vand.u32 4294901760, %v6017_v29 }
 0x121   :  { %8400 = vmatprep.subr.bf16.mxu0 %v9937_v19  ;;  %v1851_v56 = vand.u32 4294901760, %v6015_v36  ;;  %v10483_v46 = vand.u32 4294901760, %v10028_v62 }
 0x123   :  { %8010 = vmatpush3.bf16.msra.mxu1 %v9704_v21  ;;  %7431 = vmatmul.mubr.f32.vlgmr.msra.gmra.mrb[0].mxu0 %v9604_v34  ;;  %v4338_v34 = vsub.f32 %v9932_v27, %v4337_v52  ;;  %v10478_v21 = vand.u32 4294901760, %v9970_v1  ;;  %v10058_v24 = vsub.f32 %v6015_v36, %v1851_v56 }
 0x124   :  { %8402 = vmatpush3.bf16.msra.mxu0 %v9937_v19  ;;  %8012 = vmatprep.subr.bf16.mxu1 %v9741_v31 }
 0x125   :  { %8404 = vmatprep.subr.bf16.mxu0 %v9955_v63  ;;  %7449 = vmatprep.mubr.f32.mxu0 %v9979_v39  ;;  %v4339_v58 = vand.u32 4294901760, %v4338_v34  ;;  %v4320_v53 = vsub.f32 %v9970_v1, %v10478_v21  ;;  %v4353_v34 = vand.u32 4294901760, %v4352_v61  ;;  %v1935_v21 = vsub.f32 %v9983_v30, %v10480_v0 }
 0x126   :  { %v4359_v61 = vsub.f32 %v10006_v55, %v10485_v41  ;;  %v4379_v0 = vand.u32 4294901760, %v10044_v10 }
 0x127   :  { %8014 = vmatpush3.bf16.msra.mxu1 %v9741_v31  ;;  %v10034_v31 = vpack.c.bf16 %v1854_v28, %v1851_v56  ;;  %v4321_v32 = vand.u32 4294901760, %v4320_v53  ;;  %v8419_v36 = vpack.c.bf16 %v4353_v34, %v4346_v17  ;;  %v1936_v2 = vand.u32 4294901760, %v1935_v21 }
 0x128   :  { %8406 = vmatpush3.bf16.msra.mxu0 %v9955_v63  ;;  %8016 = vmatprep.subr.bf16.mxu1 %v9964_v40  ;;  %v1943_v56 = vand.u32 4294901760, %v1942_v42  ;;  %v1949_v28 = vsub.f32 %v10028_v62, %v10483_v46  ;;  %v1962_v53 = vand.u32 4294901760, %v10058_v24  ;;  %v10487_v17 = vand.u32 4294901760, %v10060_v35 }
 0x129   :  { %8408 = vmatprep.subr.bf16.mxu0 %v9966_v44  ;;  %v10084_v34 = vsub.f32 %v6017_v29, %v1857_v18  ;;  %v10086_v21 = vsub.f32 %v6018_v26, %v1860_v43  ;;  %v4360_v42 = vand.u32 4294901760, %v4359_v61  ;;  %v4373_v46 = vsub.f32 %v10042_v11, %v4372_v37 }
 0x12a   :  { %6975 = vmatmul.mubr.f32.vlgmr.msra.gmra.mrb[0].mxu1 %v9537_v59  ;;  %v8415_v59 = vpack.c.bf16 %v4339_v58, %v4332_v20  ;;  %v10071_v20 = vpack.c.bf16 %v1860_v43, %v1857_v18  ;;  %v1956_v58 = vsub.f32 %v10030_v6, %v10484_v54  ;;  %v4380_v54 = vsub.f32 %v10044_v10, %v4379_v0 }
 0x12b   :  { %8018 = vmatpush3.bf16.msra.mxu1 %v9964_v40  ;;  %6993 = vmatprep.mubr.f32.mxu1 %v1915_v9  ;;  %v4366_v9 = vsub.f32 %v10009_v51, %v10482_v22  ;;  %v8031_v41 = vpack.c.bf16 %v1943_v56, %v1936_v2  ;;  %v1950_v23 = vand.u32 4294901760, %v1949_v28  ;;  %v1963_v26 = vsub.f32 %v10058_v24, %v1962_v53 }
 0x12c   :  { %8410 = vmatpush3.bf16.msra.mxu0 %v9966_v44  ;;  %8020 = vmatprep.subr.bf16.mxu1 %v10002_v47  ;;  %v1957_v29 = vand.u32 4294901760, %v1956_v58  ;;  %v1970_v18 = vsub.f32 %v10060_v35, %v10487_v17  ;;  %v1976_v43 = vand.u32 4294901760, %v10084_v34  ;;  %v1983_v61 = vand.u32 4294901760, %v10086_v21 }
 0x12d   :  { %8412 = vmatprep.subr.bf16.mxu0 %v10011_v5  ;;  %v4367_v22 = vand.u32 4294901760, %v4366_v9  ;;  %v4374_v9 = vand.u32 4294901760, %v4373_v46  ;;  %v4381_v2 = vand.u32 4294901760, %v4380_v54  ;;  %v1964_v56 = vand.u32 4294901760, %v1963_v26 }
 0x12e   :  { %v1971_v28 = vand.u32 4294901760, %v1970_v18  ;;  %v1977_v58 = vsub.f32 %v10084_v34, %v1976_v43  ;;  %v1984_v17 = vsub.f32 %v10086_v21, %v1983_v61  ;;  %v8443_v26 = vpack.c.bf16 %v10044_v10, %v10042_v11  ;;  %v6051_v11 = vld [vmem:[%s10443_s1 + $0x200] sm:$0xff]  ;;  %v6052_v10 = vld [vmem:[%s10443_s1 + $0x208] sm:$0xff] }
 0x12f   :  { %8022 = vmatpush3.bf16.msra.mxu1 %v10002_v47  ;;  %v8055_v18 = vpack.c.bf16 %v10060_v35, %v10058_v24  ;;  %v4837_v24 = vand.u32 4294901760, %v6052_v10 }
 0x130   :  { %8414 = vmatpush3.bf16.msra.mxu0 %v10011_v5  ;;  %8024 = vmatprep.subr.bf16.mxu1 %v10034_v31  ;;  %v1978_v46 = vand.u32 4294901760, %v1977_v58  ;;  %v1985_v54 = vand.u32 4294901760, %v1984_v17  ;;  %v8439_v17 = vpack.c.bf16 %v10009_v51, %v10006_v55 }
 0x131   :  { %8416 = vmatprep.subr.bf16.mxu0 %v8415_v59 }
 0x133   :  { %8026 = vmatpush3.bf16.msra.mxu1 %v10034_v31  ;;  %7450 = vmatmul.mubr.f32.vlgmr.msra.gmra.mrb[0].mxu0 %v4321_v32  ;;  %v8423_v32 = vpack.c.bf16 %v4367_v22, %v4360_v42  ;;  %v8427_v22 = vpack.c.bf16 %v4381_v2, %v4374_v9  ;;  %v8043_v42 = vpack.c.bf16 %v1985_v54, %v1978_v46  ;;  %v10519_v2 = vand.u32 4294901760, %v9970_v1  ;;  %v6058_v46 = vld [vmem:[%s10443_s1 + $0x238] sm:$0xff] }
 0x134   :  { %8418 = vmatpush3.bf16.msra.mxu0 %v8415_v59  ;;  %8028 = vmatprep.subr.bf16.mxu1 %v10071_v20  ;;  %v8035_v59 = vpack.c.bf16 %v1957_v29, %v1950_v23  ;;  %v8039_v23 = vpack.c.bf16 %v1971_v28, %v1964_v56  ;;  %v8051_v29 = vpack.c.bf16 %v10030_v6, %v10028_v62 }
 0x135   :  { %8420 = vmatprep.subr.bf16.mxu0 %v8419_v36  ;;  %7468 = vmatprep.mubr.f32.mxu0 %v9867_v57  ;;  %v8463_v9 = vpack.c.bf16 %v4337_v52, %v4330_v38  ;;  %v10522_v52 = vand.u32 4294901760, %v10006_v55  ;;  %v4816_v55 = vld [vmem:[%s10444_s0 + $0x10] sm:$0xff] }
 0x137   :  { %8030 = vmatpush3.bf16.msra.mxu1 %v10071_v20 }
 0x138   :  { %8422 = vmatpush3.bf16.msra.mxu0 %v8419_v36  ;;  %8032 = vmatprep.subr.bf16.mxu1 %v8031_v41  ;;  %v8431_v36 = vpack.c.bf16 %v9932_v27, %v9923_v4  ;;  %v10520_v4 = vand.u32 4294901760, %v9983_v30  ;;  %v10521_v27 = vand.u32 4294901760, %v9993_v49 }
 0x139   :  { %8424 = vmatprep.subr.bf16.mxu0 %v8423_v32 }
 0x13a   :  { %6994 = vmatmul.mubr.f32.vlgmr.msra.gmra.mrb[0].mxu1 %v9979_v39  ;;  %v8435_v39 = vpack.c.bf16 %v9952_v45, %v9950_v60  ;;  %v8079_v38 = vpack.c.bf16 %v10521_v27, %v10520_v4 }
 0x13b   :  { %8034 = vmatpush3.bf16.msra.mxu1 %v8031_v41  ;;  %7012 = vmatprep.mubr.f32.mxu1 %v9895_v25  ;;  %v8047_v41 = vpack.c.bf16 %v9993_v49, %v9983_v30  ;;  %v8475_v49 = vpack.c.bf16 %v4379_v0, %v4372_v37 }
 0x13c   :  { %8426 = vmatpush3.bf16.msra.mxu0 %v8423_v32  ;;  %8036 = vmatprep.subr.bf16.mxu1 %v8035_v59  ;;  %v8059_v32 = vpack.c.bf16 %v10086_v21, %v10084_v34  ;;  %v6053_v34 = vld [vmem:[%s10443_s1 + $0x210] sm:$0xff] }
 0x13d   :  { %8428 = vmatprep.subr.bf16.mxu0 %v8427_v22  ;;  %v4840_v28 = vand.u32 4294901760, %v6053_v34 }
 0x13f   :  { %8038 = vmatpush3.bf16.msra.mxu1 %v8035_v59  ;;  %v10525_v59 = vand.u32 4294901760, %v10030_v6  ;;  %v4828_v6 = vsel %vm28_vm0, %v4816_v55, 0 }
 0x140   :  { %8430 = vmatpush3.bf16.msra.mxu0 %v8427_v22  ;;  %8040 = vmatprep.subr.bf16.mxu1 %v8039_v23  ;;  %v10197_v0 = vand.u32 4294901760, %v4828_v6 }
 0x141   :  { %8432 = vmatprep.subr.bf16.mxu0 %v8431_v36 }
 0x142   :  { %v10204_v37 = vsub.f32 %v4828_v6, %v10197_v0 }
 0x143   :  { %8042 = vmatpush3.bf16.msra.mxu1 %v8039_v23  ;;  %7469 = vmatmul.mubr.f32.vlgmr.msra.gmra.mrb[0].mxu0 %v9934_v33  ;;  %v6057_v23 = vld [vmem:[%s10443_s1 + $0x230] sm:$0xff] }
 0x144   :  { %8434 = vmatpush3.bf16.msra.mxu0 %v8431_v36  ;;  %8044 = vmatprep.subr.bf16.mxu1 %v8043_v42 }
 0x145   :  { %8436 = vmatprep.subr.bf16.mxu0 %v8435_v39  ;;  %7487 = vmatprep.mubr.f32.mxu0 %v9878_v16 }
 0x147   :  { %8046 = vmatpush3.bf16.msra.mxu1 %v8043_v42  ;;  %v10260_v42 = vsub.f32 %v6053_v34, %v4840_v28 }
 0x148   :  { %8438 = vmatpush3.bf16.msra.mxu0 %v8435_v39  ;;  %8048 = vmatprep.subr.bf16.mxu1 %v8047_v41 }
 0x149   :  { %8440 = vmatprep.subr.bf16.mxu0 %v8439_v17 }
 0x14a   :  { %7013 = vmatmul.mubr.f32.vlgmr.msra.gmra.mrb[0].mxu1 %v9867_v57 }
 0x14b   :  { %8050 = vmatpush3.bf16.msra.mxu1 %v8047_v41  ;;  %7031 = vmatprep.mubr.f32.mxu1 %v9926_v15  ;;  %v10518_v15 = vand.u32 4294901760, %v9952_v45 }
 0x14c   :  { %8442 = vmatpush3.bf16.msra.mxu0 %v8439_v17  ;;  %8052 = vmatprep.subr.bf16.mxu1 %v8051_v29 }
 0x14d   :  { %8444 = vmatprep.subr.bf16.mxu0 %v8443_v26 }
 0x14f   :  { %8054 = vmatpush3.bf16.msra.mxu1 %v8051_v29  ;;  %v4852_v29 = vand.u32 4294901760, %v6057_v23 }
 0x150   :  { %8446 = vmatpush3.bf16.msra.mxu0 %v8443_v26  ;;  %8056 = vmatprep.subr.bf16.mxu1 %v8055_v18  ;;  %v4855_v26 = vand.u32 4294901760, %v6058_v46 }
 0x151   :  { %8448 = vmatprep.subr.bf16.mxu0 %v9937_v19 }
 0x153   :  { %8058 = vmatpush3.bf16.msra.mxu1 %v8055_v18  ;;  %7488 = vmatmul.mubr.f32.vlgmr.msra.gmra.mrb[0].mxu0 %v9970_v1  ;;  %v10524_v1 = vand.u32 4294901760, %v10028_v62 }
 0x154   :  { %8450 = vmatpush3.bf16.msra.mxu0 %v9937_v19  ;;  %8060 = vmatprep.subr.bf16.mxu1 %v8059_v32 }
 0x155   :  { %8452 = vmatprep.subr.bf16.mxu0 %v9955_v63  ;;  %7506 = vmatprep.mubr.f32.mxu0 %v9917_v48  ;;  %v8083_v30 = vpack.c.bf16 %v10525_v59, %v10524_v1  ;;  %v10304_v1 = vsub.f32 %v6057_v23, %v4852_v29  ;;  %v10306_v59 = vsub.f32 %v6058_v46, %v4855_v26 }
 0x157   :  { %8062 = vmatpush3.bf16.msra.mxu1 %v8059_v32 }
 0x158   :  { %8454 = vmatpush3.bf16.msra.mxu0 %v9955_v63  ;;  %8064 = vmatprep.subr.bf16.mxu1 %v9964_v40 }
 0x159   :  { %8456 = vmatprep.subr.bf16.mxu0 %v9966_v44 }
 0x15a   :  { %7032 = vmatmul.mubr.f32.vlgmr.msra.gmra.mrb[0].mxu1 %v9878_v16  ;;  %v10517_v16 = vand.u32 4294901760, %v9950_v60  ;;  %v10523_v60 = vand.u32 4294901760, %v10009_v51  ;;  %v10526_v51 = vand.u32 4294901760, %v10060_v35  ;;  %v4908_v35 = vand.u32 4294901760, %v10204_v37 }
 0x15b   :  { %8066 = vmatpush3.bf16.msra.mxu1 %v9964_v40  ;;  %7050 = vmatprep.mubr.f32.mxu1 %v1913_v7 }
 0x15c   :  { %8458 = vmatpush3.bf16.msra.mxu0 %v9966_v44  ;;  %8068 = vmatprep.subr.bf16.mxu1 %v10002_v47  ;;  %v8467_v7 = vpack.c.bf16 %v10518_v15, %v10517_v16  ;;  %v8471_v45 = vpack.c.bf16 %v10523_v60, %v10522_v52  ;;  %v8087_v62 = vpack.c.bf16 %v10526_v51, %v1962_v53  ;;  %v4817_v53 = vld [vmem:[%s10444_s0 + $0x18] sm:$0xff] }
 0x15d   :  { %8460 = vmatprep.subr.bf16.mxu0 %v10011_v5 }
 0x15f   :  { %8070 = vmatpush3.bf16.msra.mxu1 %v10002_v47 }
 0x160   :  { %8462 = vmatpush3.bf16.msra.mxu0 %v10011_v5  ;;  %8072 = vmatprep.subr.bf16.mxu1 %v10034_v31 }
 0x161   :  { %8464 = vmatprep.subr.bf16.mxu0 %v8463_v9 }
 0x163   :  { %8074 = vmatpush3.bf16.msra.mxu1 %v10034_v31  ;;  %7507 = vmatmul.mubr.f32.vlgmr.msra.gmra.mrb[0].mxu0 %v10519_v2  ;;  %v10290_v2 = vpack.c.bf16 %v4855_v26, %v4852_v29 }
 0x164   :  { %8466 = vmatpush3.bf16.msra.mxu0 %v8463_v9  ;;  %8076 = vmatprep.subr.bf16.mxu1 %v10071_v20 }
 0x165   :  { %8468 = vmatprep.subr.bf16.mxu0 %v8467_v7  ;;  %7525 = vmatprep.mubr.f32.mxu0 %v9867_v57 }
 0x167   :  { %8078 = vmatpush3.bf16.msra.mxu1 %v10071_v20 }
 0x168   :  { %8470 = vmatpush3.bf16.msra.mxu0 %v8467_v7  ;;  %8080 = vmatprep.subr.bf16.mxu1 %v8079_v38 }
 0x169   :  { %8472 = vmatprep.subr.bf16.mxu0 %v8471_v45 }
 0x16a   :  { %7051 = vmatmul.mubr.f32.vlgmr.msra.gmra.mrb[0].mxu1 %v9917_v48  ;;  %v8091_v48 = vpack.c.bf16 %v1983_v61, %v1976_v43  ;;  %v10232_v43 = vsub.f32 %v6052_v10, %v4837_v24  ;;  %v4831_v61 = vsel %vm28_vm0, %v4817_v53, 0  ;;  %v10527_v53 = vand.u32 4294901760, %v9117_v3 }
 0x16b   :  { %8082 = vmatpush3.bf16.msra.mxu1 %v8079_v38  ;;  %7069 = vmatprep.mubr.f32.mxu1 %v9895_v25  ;;  %v10248_v22 = vand.u32 4294901760, %v4831_v61 }
 0x16c   :  { %8474 = vmatpush3.bf16.msra.mxu0 %v8471_v45  ;;  %8084 = vmatprep.subr.bf16.mxu1 %v8083_v30  ;;  %v4936_v36 = vand.u32 4294901760, %v10232_v43 }
 0x16d   :  { %8476 = vmatprep.subr.bf16.mxu0 %v8475_v49  ;;  %v10270_v18 = vsub.f32 %v4831_v61, %v10248_v22 }
 0x16e   :  { %v4937_v9 = vsub.f32 %v10232_v43, %v4936_v36 }
 0x16f   :  { %8086 = vmatpush3.bf16.msra.mxu1 %v8083_v30  ;;  %v4918_v4 = vand.u32 4294901760, %v10270_v18 }
 0x170   :  { %8478 = vmatpush3.bf16.msra.mxu0 %v8475_v49  ;;  %8088 = vmatprep.subr.bf16.mxu1 %v8087_v62  ;;  %v4938_v38 = vand.u32 4294901760, %v4937_v9 }
 0x171   :  { %8480 = vmatprep.subr.bf16.mxu0 %v9937_v19  ;;  %v4919_v30 = vsub.f32 %v10270_v18, %v4918_v4 }
 0x173   :  { %8090 = vmatpush3.bf16.msra.mxu1 %v8087_v62  ;;  %7526 = vmatmul.mubr.f32.vlgmr.msra.gmra.mrb[0].mxu0 %v9934_v33  ;;  %v4971_v62 = vand.u32 4294901760, %v10304_v1  ;;  %v4920_v6 = vand.u32 4294901760, %v4919_v30 }
 0x174   :  { %8482 = vmatpush3.bf16.msra.mxu0 %v9937_v19  ;;  %8092 = vmatprep.subr.bf16.mxu1 %v8091_v48  ;;  %v4834_v19 = vand.u32 4294901760, %v6051_v11 }
 0x175   :  { %8484 = vmatprep.subr.bf16.mxu0 %v9955_v63  ;;  %7544 = vmatprep.mubr.f32.mxu0 %v9867_v57 }
 0x176   :  { %v10230_v21 = vsub.f32 %v6051_v11, %v4834_v19  ;;  %v10236_v56 = vpack.c.bf16 %v4837_v24, %v4834_v19  ;;  %v4972_v19 = vsub.f32 %v10304_v1, %v4971_v62 }
 0x177   :  { %8094 = vmatpush3.bf16.msra.mxu1 %v8091_v48 }
 0x178   :  { %8486 = vmatpush3.bf16.msra.mxu0 %v9955_v63  ;;  %8096 = vmatprep.subr.bf16.mxu1 %v9964_v40  ;;  %v6054_v63 = vld [vmem:[%s10443_s1 + $0x218] sm:$0xff]  ;;  %v4929_v54 = vand.u32 4294901760, %v10230_v21 }
 0x179   :  { %8488 = vmatprep.subr.bf16.mxu0 %v9966_v44  ;;  %v4843_v58 = vand.u32 4294901760, %v6054_v63 }
 0x17a   :  { %7070 = vmatmul.mubr.f32.vlgmr.msra.gmra.mrb[0].mxu1 %v9867_v57  ;;  %v4930_v32 = vsub.f32 %v10230_v21, %v4929_v54 }
 0x17b   :  { %8098 = vmatpush3.bf16.msra.mxu1 %v9964_v40  ;;  %7088 = vmatprep.mubr.f32.mxu1 %v9895_v25  ;;  %v4909_v25 = vsub.f32 %v10204_v37, %v4908_v35  ;;  %v6055_v40 = vld [vmem:[%s10443_s1 + $0x220] sm:$0xff] }
 0x17c   :  { %8490 = vmatpush3.bf16.msra.mxu0 %v9966_v44  ;;  %8100 = vmatprep.subr.bf16.mxu1 %v10002_v47  ;;  %v6056_v44 = vld [vmem:[%s10443_s1 + $0x228] sm:$0xff]  ;;  %v4846_v39 = vand.u32 4294901760, %v6055_v40  ;;  %v4931_v27 = vand.u32 4294901760, %v4930_v32 }
 0x17d   :  { %8492 = vmatprep.subr.bf16.mxu0 %v10011_v5  ;;  %v4849_v41 = vand.u32 4294901760, %v6056_v44  ;;  %v4910_v17 = vand.u32 4294901760, %v4909_v25  ;;  %v8539_v25 = vpack.c.bf16 %v10306_v59, %v10304_v1 }
 0x17e   :  { %v10285_v15 = vsub.f32 %v6055_v40, %v4846_v39  ;;  %v8511_v49 = vpack.c.bf16 %v4938_v38, %v4931_v27  ;;  %v8559_v40 = vpack.c.bf16 %v4936_v36, %v4929_v54  ;;  %v5419_v36 = vld [vmem:[%s10445_s2 + $0x10] sm:$0xff] }
 0x17f   :  { %8102 = vmatpush3.bf16.msra.mxu1 %v10002_v47  ;;  %v10262_v47 = vsub.f32 %v6054_v63, %v4843_v58  ;;  %v10283_v16 = vpack.c.bf16 %v4849_v41, %v4846_v39  ;;  %v10287_v7 = vsub.f32 %v6056_v44, %v4849_v41  ;;  %v4973_v63 = vand.u32 4294901760, %v4972_v19 }
 0x180   :  { %8494 = vmatpush3.bf16.msra.mxu0 %v10011_v5  ;;  %8104 = vmatprep.subr.bf16.mxu1 %v10034_v31  ;;  %v10265_v5 = vpack.c.bf16 %v4843_v58, %v4840_v28 }
 0x181   :  { %8496 = vmatprep.subr.bf16.mxu0 %v10236_v56  ;;  %v4964_v45 = vand.u32 4294901760, %v10287_v7 }
 0x183   :  { %8106 = vmatpush3.bf16.msra.mxu1 %v10034_v31  ;;  %7545 = vmatmul.mubr.f32.vlgmr.msra.gmra.mrb[0].mxu0 %v9934_v33  ;;  %v4943_v31 = vand.u32 4294901760, %v10260_v42  ;;  %v4950_v33 = vand.u32 4294901760, %v10262_v47 }
 0x184   :  { %8498 = vmatpush3.bf16.msra.mxu0 %v10236_v56  ;;  %8108 = vmatprep.subr.bf16.mxu1 %v10071_v20 }
 0x185   :  { %8500 = vmatprep.subr.bf16.mxu0 %v10265_v5  ;;  %7563 = vmatprep.mubr.f32.mxu0 %v4910_v17  ;;  %v4944_v52 = vsub.f32 %v10260_v42, %v4943_v31  ;;  %v4951_v60 = vsub.f32 %v10262_v47, %v4950_v33 }
 0x187   :  { %8110 = vmatpush3.bf16.msra.mxu1 %v10071_v20  ;;  %v4957_v20 = vand.u32 4294901760, %v10285_v15  ;;  %v4945_v55 = vand.u32 4294901760, %v4944_v52  ;;  %v4952_v51 = vand.u32 4294901760, %v4951_v60 }
 0x188   :  { %8502 = vmatpush3.bf16.msra.mxu0 %v10265_v5  ;;  %8112 = vmatprep.subr.bf16.mxu1 %v9114_v14 }
 0x189   :  { %8504 = vmatprep.subr.bf16.mxu0 %v10283_v16  ;;  %v8515_v48 = vpack.c.bf16 %v4952_v51, %v4945_v55 }
 0x18a   :  { %7089 = vmatmul.mubr.f32.vlgmr.msra.gmra.mrb[0].mxu1 %v9867_v57  ;;  %v4958_v57 = vsub.f32 %v10285_v15, %v4957_v20 }
 0x18b   :  { %8114 = vmatpush3.bf16.msra.mxu1 %v9114_v14  ;;  %7107 = vmatprep.mubr.f32.mxu1 %v9051_v50  ;;  %v4965_v14 = vsub.f32 %v10287_v7, %v4964_v45  ;;  %v4978_v50 = vand.u32 4294901760, %v10306_v59 }
 0x18c   :  { %8506 = vmatpush3.bf16.msra.mxu0 %v10283_v16  ;;  %8116 = vmatprep.subr.bf16.mxu1 %v9125_v8  ;;  %v4959_v11 = vand.u32 4294901760, %v4958_v57 }
 0x18d   :  { %8508 = vmatprep.subr.bf16.mxu0 %v10290_v2  ;;  %v4966_v10 = vand.u32 4294901760, %v4965_v14  ;;  %v4979_v24 = vsub.f32 %v10306_v59, %v4978_v50  ;;  %v5994_v59 = vld [vmem:[%s10446_s3] ss:$0 sm:$0xff] }
 0x18f   :  { %8118 = vmatpush3.bf16.msra.mxu1 %v9125_v8  ;;  %v2523_v8 = vsub.f32 %v9117_v3, %v10527_v53  ;;  %v8519_v34 = vpack.c.bf16 %v4966_v10, %v4959_v11  ;;  %v4980_v61 = vand.u32 4294901760, %v4979_v24  ;;  %v8527_v3 = vpack.c.bf16 %v10232_v43, %v10230_v21  ;;  %v5417_v43 = vld [vmem:[%s10445_s2] sm:$0xff] }
 0x190   :  { %8510 = vmatpush3.bf16.msra.mxu0 %v10290_v2  ;;  %8120 = vmatprep.subr.bf16.mxu1 %v9134_v12  ;;  %v8571_v21 = vpack.c.bf16 %v4978_v50, %v4971_v62 }
 0x191   :  { %8512 = vmatprep.subr.bf16.mxu0 %v8511_v49  ;;  %v2524_v28 = vand.u32 4294901760, %v2523_v8  ;;  %v8523_v58 = vpack.c.bf16 %v4980_v61, %v4973_v63 }
 0x193   :  { %8122 = vmatpush3.bf16.msra.mxu1 %v9134_v12  ;;  %7564 = vmatmul.mubr.f32.vlgmr.msra.gmra.mrb[0].mxu0 %v4920_v6  ;;  %v8531_v12 = vpack.c.bf16 %v10262_v47, %v10260_v42  ;;  %v5435_v42 = vand.u32 4294901760, %v5419_v36 }
 0x194   :  { %8514 = vmatpush3.bf16.msra.mxu0 %v8511_v49  ;;  %8124 = vmatprep.subr.bf16.mxu1 %v9144_v13 }
 0x195   :  { %8516 = vmatprep.subr.bf16.mxu0 %v8515_v48  ;;  %7582 = vmatprep.mubr.f32.mxu0 %v10197_v0  ;;  %v5533_v26 = vsub.f32 %v5419_v36, %v5435_v42 }
 0x197   :  { %8126 = vmatpush3.bf16.msra.mxu1 %v9144_v13  ;;  %v8535_v13 = vpack.c.bf16 %v10287_v7, %v10285_v15 }
 0x198   :  { %8518 = vmatpush3.bf16.msra.mxu0 %v8515_v48 }
 0x199   :  { %8520 = vmatprep.subr.bf16.mxu0 %v8519_v34 }
 0x19a   :  { %7108 = vmatmul.mubr.f32.vlgmr.msra.gmra.mrb[0].mxu1 %v2524_v28 }
 0x19c   :  { %8522 = vmatpush3.bf16.msra.mxu0 %v8519_v34 }
 0x19d   :  { %8524 = vmatprep.subr.bf16.mxu0 %v8523_v58 }
 0x1a0   :  { %8526 = vmatpush3.bf16.msra.mxu0 %v8523_v58 }
 0x1a1   :  { %8528 = vmatprep.subr.bf16.mxu0 %v8527_v3 }
 0x1a3   :  { %7583 = vmatmul.mubr.f32.vlgmr.msra.gmra.mrb[0].mxu0 %v10248_v22 }
 0x1a4   :  { %8530 = vmatpush3.bf16.msra.mxu0 %v8527_v3  ;;  %7601 = vmatprep.mubr.f32.mxu0 %v10204_v37  ;;  %v8563_v37 = vpack.c.bf16 %v4950_v33, %v4943_v31  ;;  %v5534_v31 = vand.u32 4294901760, %v5533_v26 }
 0x1a5   :  { %8532 = vmatprep.subr.bf16.mxu0 %v8531_v12 }
 0x1a6   :  { %v5535_v15 = vsub.f32 %v5533_v26, %v5534_v31 }
 0x1a8   :  { %8534 = vmatpush3.bf16.msra.mxu0 %v8531_v12 }
 0x1a9   :  { %8536 = vmatprep.subr.bf16.mxu0 %v8535_v13 }
 0x1ac   :  { %8538 = vmatpush3.bf16.msra.mxu0 %v8535_v13 }
 0x1ad   :  { %8540 = vmatprep.subr.bf16.mxu0 %v8539_v25 }
 0x1b0   :  { %8542 = vmatpush3.bf16.msra.mxu0 %v8539_v25 }
 0x1b1   :  { %8544 = vmatprep.subr.bf16.mxu0 %v10236_v56 }
 0x1b3   :  { %7602 = vmatmul.mubr.f32.vlgmr.msra.gmra.mrb[0].mxu0 %v10270_v18 }
 0x1b4   :  { %8546 = vmatpush3.bf16.msra.mxu0 %v10236_v56  ;;  %7620 = vmatprep.mubr.f32.mxu0 %v4908_v35  ;;  %v8567_v35 = vpack.c.bf16 %v4964_v45, %v4957_v20 }
 0x1b5   :  { %8548 = vmatprep.subr.bf16.mxu0 %v10265_v5 }
 0x1b8   :  { %8550 = vmatpush3.bf16.msra.mxu0 %v10265_v5 }
 0x1b9   :  { %8552 = vmatprep.subr.bf16.mxu0 %v10283_v16 }
 0x1bc   :  { %8554 = vmatpush3.bf16.msra.mxu0 %v10283_v16 }
 0x1bd   :  { %8556 = vmatprep.subr.bf16.mxu0 %v10290_v2 }
 0x1c0   :  { %8558 = vmatpush3.bf16.msra.mxu0 %v10290_v2 }
 0x1c1   :  { %8560 = vmatprep.subr.bf16.mxu0 %v8559_v40 }
 0x1c3   :  { %7621 = vmatmul.mubr.f32.vlgmr.msra.gmra.mrb[0].mxu0 %v4918_v4 }
 0x1c4   :  { %8562 = vmatpush3.bf16.msra.mxu0 %v8559_v40  ;;  %7639 = vmatprep.mubr.f32.mxu0 %v10197_v0 }
 0x1c5   :  { %8564 = vmatprep.subr.bf16.mxu0 %v8563_v37 }
 0x1c8   :  { %8566 = vmatpush3.bf16.msra.mxu0 %v8563_v37 }
 0x1c9   :  { %8568 = vmatprep.subr.bf16.mxu0 %v8567_v35 }
 0x1cc   :  { %8570 = vmatpush3.bf16.msra.mxu0 %v8567_v35 }
 0x1cd   :  { %8572 = vmatprep.subr.bf16.mxu0 %v8571_v21 }
 0x1d0   :  { %8574 = vmatpush3.bf16.msra.mxu0 %v8571_v21 }
 0x1d1   :  { %8576 = vmatprep.subr.bf16.mxu0 %v10236_v56 }
 0x1d3   :  { %7640 = vmatmul.mubr.f32.vlgmr.msra.gmra.mrb[0].mxu0 %v10248_v22 }
 0x1d4   :  { %8578 = vmatpush3.bf16.msra.mxu0 %v10236_v56  ;;  %7658 = vmatprep.mubr.f32.mxu0 %v10197_v0  ;;  %v5418_v0 = vld [vmem:[%s10445_s2 + $0x8] sm:$0xff]  ;;  %v5429_v56 = vand.u32 4294901760, %v5417_v43 }
 0x1d5   :  { %8580 = vmatprep.subr.bf16.mxu0 %v10265_v5  ;;  %v5432_v44 = vand.u32 4294901760, %v5418_v0 }
 0x1d6   :  { %v5519_v46 = vsub.f32 %v5417_v43, %v5429_v56 }
 0x1d7   :  { %v10398_v23 = vpack.c.bf16 %v5432_v44, %v5429_v56  ;;  %v5526_v54 = vsub.f32 %v5418_v0, %v5432_v44 }
 0x1d8   :  { %8582 = vmatpush3.bf16.msra.mxu0 %v10265_v5  ;;  %v5520_v5 = vand.u32 4294901760, %v5519_v46 }
 0x1d9   :  { %8584 = vmatprep.subr.bf16.mxu0 %v10283_v16  ;;  %8592 = vmatprep.subr.bf16.mxu1 %v10398_v23  ;;  %v5527_v39 = vand.u32 4294901760, %v5526_v54  ;;  %v8607_v38 = vpack.c.bf16 %v5526_v54, %v5519_v46 }
 0x1da   :  { %8594 = vmatpush3.bf16.msra.mxu1 %v10398_v23  ;;  %v5521_v17 = vsub.f32 %v5519_v46, %v5520_v5 }
 0x1db   :  { %v5528_v29 = vsub.f32 %v5526_v54, %v5527_v39  ;;  %v8623_v60 = vpack.c.bf16 %v5527_v39, %v5520_v5 }
 0x1dc   :  { %8586 = vmatpush3.bf16.msra.mxu0 %v10283_v16  ;;  %v5522_v32 = vand.u32 4294901760, %v5521_v17 }
 0x1dd   :  { %8588 = vmatprep.subr.bf16.mxu0 %v10290_v2  ;;  %v5529_v9 = vand.u32 4294901760, %v5528_v29 }
 0x1df   :  { %v8599_v16 = vpack.c.bf16 %v5529_v9, %v5522_v32 }
 0x1e0   :  { %8590 = vmatpush3.bf16.msra.mxu0 %v10290_v2  ;;  %v5536_v2 = vand.u32 4294901760, %v5535_v15 }
 0x1e3   :  { %7659 = vmatmul.mubr.f32.vlgmr.msra.gmra.mrb[0].mxu0 %v10248_v22  ;;  %v5420_v22 = vld [vmem:[%s10445_s2 + $0x18] sm:$0xff] }
 0x1e4   :  { %v5438_v47 = vand.u32 4294901760, %v5420_v22 }
 0x1e6   :  { %v10408_v41 = vpack.c.bf16 %v5438_v47, %v5435_v42  ;;  %v5540_v18 = vsub.f32 %v5420_v22, %v5438_v47 }
 0x1e8   :  { %8596 = vmatprep.subr.bf16.mxu1 %v10408_v41  ;;  %v5541_v33 = vand.u32 4294901760, %v5540_v18  ;;  %v8611_v52 = vpack.c.bf16 %v5540_v18, %v5533_v26 }
 0x1e9   :  { %8598 = vmatpush3.bf16.msra.mxu1 %v10408_v41 }
 0x1ea   :  { %v5542_v7 = vsub.f32 %v5540_v18, %v5541_v33  ;;  %8600 = vmatprep.subr.bf16.mxu1 %v8599_v16  ;;  %v8627_v20 = vpack.c.bf16 %v5541_v33, %v5534_v31 }
 0x1ec   :  { %v5543_v4 = vand.u32 4294901760, %v5542_v7 }
 0x1ee   :  { %v8603_v27 = vpack.c.bf16 %v5543_v4, %v5536_v2 }
 0x26d   :  { %v7109_v45 = vpop.f32.mrb[0].mxu1 }
 0x26e   :  { %v2516_v1 = vpop.f32.mrb[1].mxu1  ;;  %v8639_v30 = vadd.f32 %v7109_v45, %v5994_v59 }
 0x26f   :  { %v8641_v49 = vadd.f32 %v5994_v59, %v2516_v1 }
 0x2b6   :  { %v7660_v55 = vpop.f32.mrb[0].mxu0 }
 0x2b7   :  { %v10415_v51 = vadd.f32 %v8639_v30, %v7660_v55  ;;  %v5403_v57 = vpop.f32.mrb[1].mxu0 }
 0x2b8   :  { %v10417_v14 = vadd.f32 %v8641_v49, %v5403_v57 }
 0x2b9   :  { %v5416_v62 = vmul.f32 %v10415_v51, %v10415_v51 }
 0x2ba   :  { %v5415_v50 = vmul.f32 %v10417_v14, %v10417_v14 }
 0x2bb   :  { %v5426_v6 = vsel %vm5421_vm1, %v5416_v62, 0 }
 0x2bc   :  { %v5507_v48 = vand.u32 4294901760, %v5426_v6  ;;  %v5423_v11 = vsel %vm5421_vm1, %v5415_v50, 0 }
 0x2bd   :  { %v5497_v10 = vand.u32 4294901760, %v5423_v11 }
 0x2be   :  { %v5508_v19 = vsub.f32 %v5426_v6, %v5507_v48 }
 0x2bf   :  { %v5498_v24 = vsub.f32 %v5423_v11, %v5497_v10 }
 0x2c0   :  { %v5509_v53 = vand.u32 4294901760, %v5508_v19 }
 0x2c1   :  { %v5499_v8 = vand.u32 4294901760, %v5498_v24 }
 0x2c2   :  { %v5510_v34 = vsub.f32 %v5508_v19, %v5509_v53 }
 0x2c3   :  { %v5500_v63 = vsub.f32 %v5498_v24, %v5499_v8 }
 0x2c4   :  { %v5511_v28 = vand.u32 4294901760, %v5510_v34 }
 0x2c5   :  { %v5501_v61 = vand.u32 4294901760, %v5500_v63 }
 0x2c7   :  { %7669 = vmatprep.mubr.f32.mxu1 %v5501_v61 }
 0x2c8   :  { %7670 = vmatmul.mubr.f32.vlgmr.msra.gmra.mrb[2].mxu1 %v5511_v28 }
 0x2c9   :  { %8602 = vmatpush3.bf16.msra.mxu1 %v8599_v16  ;;  %7680 = vmatprep.mubr.f32.mxu1 %v5497_v10 }
 0x2ca   :  { %8604 = vmatprep.subr.bf16.mxu1 %v8603_v27 }
 0x2cd   :  { %8606 = vmatpush3.bf16.msra.mxu1 %v8603_v27 }
 0x2ce   :  { %8608 = vmatprep.subr.bf16.mxu1 %v8607_v38 }
 0x2d0   :  { %7681 = vmatmul.mubr.f32.vlgmr.msra.gmra.mrb[2].mxu1 %v5507_v48 }
 0x2d1   :  { %8610 = vmatpush3.bf16.msra.mxu1 %v8607_v38  ;;  %7691 = vmatprep.mubr.f32.mxu1 %v5498_v24 }
 0x2d2   :  { %8612 = vmatprep.subr.bf16.mxu1 %v8611_v52 }
 0x2d5   :  { %8614 = vmatpush3.bf16.msra.mxu1 %v8611_v52 }
 0x2d6   :  { %8616 = vmatprep.subr.bf16.mxu1 %v10398_v23 }
 0x2d8   :  { %7692 = vmatmul.mubr.f32.vlgmr.msra.gmra.mrb[2].mxu1 %v5508_v19 }
 0x2d9   :  { %8618 = vmatpush3.bf16.msra.mxu1 %v10398_v23  ;;  %7702 = vmatprep.mubr.f32.mxu1 %v5499_v8 }
 0x2da   :  { %8620 = vmatprep.subr.bf16.mxu1 %v10408_v41 }
 0x2dd   :  { %8622 = vmatpush3.bf16.msra.mxu1 %v10408_v41 }
 0x2de   :  { %8624 = vmatprep.subr.bf16.mxu1 %v8623_v60 }
 0x2e0   :  { %7703 = vmatmul.mubr.f32.vlgmr.msra.gmra.mrb[2].mxu1 %v5509_v53 }
 0x2e1   :  { %8626 = vmatpush3.bf16.msra.mxu1 %v8623_v60  ;;  %7713 = vmatprep.mubr.f32.mxu1 %v5497_v10 }
 0x2e2   :  { %8628 = vmatprep.subr.bf16.mxu1 %v8627_v20 }
 0x2e5   :  { %8630 = vmatpush3.bf16.msra.mxu1 %v8627_v20 }
 0x2e6   :  { %8632 = vmatprep.subr.bf16.mxu1 %v10398_v23 }
 0x2e8   :  { %7714 = vmatmul.mubr.f32.vlgmr.msra.gmra.mrb[2].mxu1 %v5507_v48 }
 0x2e9   :  { %8634 = vmatpush3.bf16.msra.mxu1 %v10398_v23  ;;  %7724 = vmatprep.mubr.f32.mxu1 %v5497_v10 }
 0x2ea   :  { %8636 = vmatprep.subr.bf16.mxu1 %v10408_v41 }
 0x2ed   :  { %8638 = vmatpush3.bf16.msra.mxu1 %v10408_v41 }
 0x2f0   :  { %7725 = vmatmul.mubr.f32.vlgmr.msra.gmra.mrb[2].mxu1 %v5507_v48 }
 0x3c3   :  { %v7726_v58 = vpop.f32.mrb[2].mxu1 }
 0x3c4   :  { %8757 = vrsqrt.f32 %v7726_v58  ;;  %v5946_v3 = vpop.f32.mrb[3].mxu1  ;;  %vm5965_vm2 = vcmp.eq.f32.partialorder %v7726_v58, inf  ;;  %v5968_v40 = vand.u32 2147483648, %v7726_v58  ;;  %vm5967_vm3 = vcmp.eq.f32.partialorder %v7726_v58, 0.0 }
 0x3c5   :  { %8759 = vrsqrt.f32 %v5946_v3  ;;  %vm5958_vm4 = vcmp.eq.f32.partialorder %v5946_v3, inf  ;;  %v5961_v21 = vand.u32 2147483648, %v5946_v3  ;;  %vm5960_vm5 = vcmp.eq.f32.partialorder %v5946_v3, 0.0 }
 0x3ce   :  { %v8758_v12 = vpop.eup %8757 }
 0x3cf   :  { %v8760_v13 = vpop.eup %8759  ;;  %v5964_v25 = vmul.f32 %v8758_v12, %v7726_v58 }
 0x3d0   :  { %v5957_v37 = vmul.f32 %v8760_v13, %v5946_v3 }
 0x3d1   :  { %v5966_v35 = vsel %vm5965_vm2, %v7726_v58, %v5964_v25 }
 0x3d2   :  { %v5969_v43 = vsel %vm5967_vm3, %v5968_v40, %v5966_v35  ;;  %v5959_v0 = vsel %vm5958_vm4, %v5946_v3, %v5957_v37 }
 0x3d3   :  { %v5972_v56 = vmul.f32 1.442695, %v5969_v43  ;;  %v5962_v44 = vsel %vm5960_vm5, %v5961_v21, %v5959_v0  ;;  %v5981_v54 = vadd.f32 1e-20, %v5969_v43 }
 0x3d4   :  { %v5970_v23 = vmul.f32 1.442695, %v5962_v44  ;;  %v5980_v47 = vadd.f32 1e-20, %v5962_v44 }
 0x3d5   :  { %8761 = vpow2.f32 %v5972_v56 }
 0x3d6   :  { %8763 = vpow2.f32 %v5970_v23 }
 0x3df   :  { %v8762_v46 = vpop.eup %8761 }
 0x3e0   :  { %v5975_v36 = vadd.f32 1e-20, %v8762_v46  ;;  %v8764_v22 = vpop.eup %8763 }
 0x3e1   :  { %v5974_v42 = vadd.f32 1e-20, %v8764_v22 }
 0x3e2   :  { %8765 = vrcp.f32 %v5975_v36 }
 0x3e3   :  { %8767 = vrcp.f32 %v5981_v54 }
 0x3e4   :  { %8769 = vrcp.f32 %v5974_v42 }
 0x3e5   :  { %8771 = vrcp.f32 %v5980_v47 }
 0x3ec   :  { %v8766_v5 = vpop.eup %8765 }
 0x3ed   :  { %v8768_v39 = vpop.eup %8767  ;;  %v5979_v41 = vsub.f32 1.0, %v8766_v5 }
 0x3ee   :  { %v8770_v17 = vpop.eup %8769 }
 0x3ef   :  { %v5985_v29 = vmul.f32 %v8768_v39, %v5979_v41  ;;  %v5978_v26 = vsub.f32 1.0, %v8770_v17  ;;  %v8772_v18 = vpop.eup %8771 }
 0x3f1   :  { %v5987_v32 = vmul.f32 %v10415_v51, %v5985_v29  ;;  %v5984_v9 = vmul.f32 %v8772_v18, %v5978_v26 }
 0x3f3   :  { %v5986_v31 = vmul.f32 %v10417_v14, %v5984_v9  ;;  %5989 = vst.msk [vmem:[%s10447_s4 + $0x8] sm:$0xff] %vm5421_vm1, %v5987_v32 }
 0x3f5   :  { %5988 = vst.msk [vmem:[%s10447_s4] sm:$0xff] %vm5421_vm1, %v5986_v31 }

</bundles_post_ra>
